<compile_context>
chip_gen: v5e
topology: v5e:2x2
jax: 0.10.0
libtpu: 0.0.40
codegen_flags: <defaults>
</compile_context>

<pallas_src>
import math
import functools

import jax
import jax.numpy as jnp
from jax import lax
from jax.experimental import pallas as pl
from jax.experimental.pallas import tpu as pltpu  # noqa: F401  (TPU backend module)


# ----------------------------------------------------------------------------
# Fused kernel: attention block + LSTM recurrence + final fc, whole batch
# ----------------------------------------------------------------------------
def fused_attn_lstm_kernel(x_ref, wqkv_ref, bqkv_ref, wa_ref, ba_ref,
                           wih_ref, whh_ref, blstm_ref, wfc_ref, bfc_ref,
                           o_ref, *, qkv, hidden_size, seq_len, inv_scale,
                           mxu_dtype, approx_recip):
    H = hidden_size
    B, T, D = x_ref.shape

    x = x_ref[...]                                      # f32 (B, T, D)
    x2d = x.reshape(B * T, D)
    x_mx = x2d.astype(mxu_dtype)

    # ---- attention: fused Q/K/V projection, one (B*T, D) @ (D, 3*qkv) push --
    qkv_all = (jnp.dot(x_mx, wqkv_ref[...], preferred_element_type=jnp.float32)
               + bqkv_ref[...])                         # (B*T, 3*qkv) f32
    q = qkv_all[:, 0 * qkv:1 * qkv].reshape(B, T, qkv).astype(mxu_dtype)
    k = qkv_all[:, 1 * qkv:2 * qkv].reshape(B, T, qkv).astype(mxu_dtype)
    v = qkv_all[:, 2 * qkv:3 * qkv].reshape(B, T, qkv).astype(mxu_dtype)

    dot = jnp.einsum("btq,bsq->bts", q, k,
                     preferred_element_type=jnp.float32) * inv_scale
    dot = dot - jnp.max(dot, axis=-1, keepdims=True)    # stabilized softmax
    e = jnp.exp(dot)
    denom = jnp.sum(e, axis=-1, keepdims=True)
    if approx_recip:
        scores = e * pl.reciprocal(denom, approx=True)  # EUP, off the VALU path
    else:
        scores = e / denom

    # scores @ V + x residual (qkv == D is asserted in the wrapper)
    scaled = (jnp.einsum("bts,bsq->btq", scores.astype(mxu_dtype), v,
                         preferred_element_type=jnp.float32) + x)
    attn2d = (jnp.dot(scaled.reshape(B * T, qkv).astype(mxu_dtype), wa_ref[...],
                      preferred_element_type=jnp.float32)
              + ba_ref[...] + x2d)                      # (B*T, D), attn(.) + x

    # ---- LSTM: input projection hoisted out of the serial recurrence --------
    xw = (jnp.dot(attn2d.astype(mxu_dtype), wih_ref[...],
                  preferred_element_type=jnp.float32)
          + blstm_ref[...]).reshape(B, T, 4 * H)        # (B, T, 4H) f32
    whh = whh_ref[...]                                  # (H, 4H) bf16

    h = jnp.zeros((B, H), jnp.float32)                  # state kept in f32
    c = jnp.zeros((B, H), jnp.float32)
    # TODO(synk): bound live ranges with lax.fori_loop(..., unroll=True) over a
    #             VMEM scratch before T/H grow (fine at T=8, H=32).
    for t in range(seq_len):                            # static unroll
        gates = xw[:, t, :] + jnp.dot(h.astype(mxu_dtype), whh,
                                      preferred_element_type=jnp.float32)
        sig = jax.nn.sigmoid(gates)                     # full-width (B, 4H)
        tnh = jnp.tanh(gates)                           # full-width (B, 4H)
        i = sig[:, 0 * H:1 * H]                         # PyTorch gate order i,f,g,o
        f = sig[:, 1 * H:2 * H]
        g = tnh[:, 2 * H:3 * H]
        o = sig[:, 3 * H:4 * H]
        c = f * c + i * g
        h = o * jnp.tanh(c)

    o_ref[...] = (jnp.dot(h.astype(mxu_dtype), wfc_ref[...],
                          preferred_element_type=jnp.float32)
                  + bfc_ref[...]).astype(o_ref.dtype)   # (B, output_size)


# ----------------------------------------------------------------------------
# Wrapper
# ----------------------------------------------------------------------------
def attentional_lstm_forward(x, p, *, qkv, hidden_size, output_size,
                             mxu_dtype=jnp.bfloat16, approx_recip=True):
    B, T, D = x.shape
    H = hidden_size
    # The forward adds scores@V and attn(.) directly to x, so qkv must equal
    # input_size; fail loudly instead of deep inside the kernel.
    assert qkv == D, f"AttentionalLSTM requires qkv == input_size ({qkv} != {D})"
    inv_scale = 1.0 / math.sqrt(qkv)

    # Pre-fuse / pre-transpose / pre-cast weights ONCE in XLA (no in-kernel
    # transposes, single fused QKV matmul, b_ih + b_hh pre-summed).
    wd = mxu_dtype
    w_qkv_t = jnp.concatenate([p["wq"].T, p["wk"].T, p["wv"].T], axis=1).astype(wd)  # (D, 3*qkv)
    b_qkv = jnp.concatenate([p["bq"], p["bk"], p["bv"]], axis=1)                     # (1, 3*qkv) f32
    wa_t = p["wa"].T.astype(wd)                                                      # (qkv, D)
    w_ih_t = p["w_ih"].T.astype(wd)                                                  # (D, 4H)
    w_hh_t = p["w_hh"].T.astype(wd)                                                  # (H, 4H)
    b_lstm = p["b_ih"] + p["b_hh"]                                                   # (1, 4H) f32
    w_fc_t = p["w_fc"].T.astype(wd)                                                  # (H, out)

    kernel = functools.partial(fused_attn_lstm_kernel, qkv=qkv, hidden_size=H,
                               seq_len=T, inv_scale=inv_scale,
                               mxu_dtype=mxu_dtype, approx_recip=approx_recip)

    # Single kernel invocation, no grid: everything (a few tens of KiB) lives
    # as full-extent VMEM blocks, the whole batch is folded into matmul rows,
    # and the output block is the full (B, output_size) array.
    # NOTE: for v7x megacore, re-introduce a "parallel" batch grid only when
    # the per-core batch slab is big enough to amortize ~600 cycles (B >= 16).
    out = pl.pallas_call(
        kernel,
        out_shape=jax.ShapeDtypeStruct((B, output_size), jnp.float32),
    )(x, w_qkv_t, b_qkv, wa_t, p["ba"], w_ih_t, w_hh_t, b_lstm, w_fc_t, p["b_fc"])

    return out


# ----------------------------------------------------------------------------
# Pure-JAX reference (mirrors the PyTorch forward, exact f32)
# ----------------------------------------------------------------------------
def reference_forward(x, p, *, qkv, hidden_size):
    scale = math.sqrt(qkv)
    lin = lambda a, w, b: a @ w.T + b

    Q, K, V = lin(x, p["wq"], p["bq"]), lin(x, p["wk"], p["bk"]), lin(x, p["wv"], p["bv"])
    dot = jnp.einsum("btq,bsq->bts", Q, K) / scale
    scores = jax.nn.softmax(dot, axis=-1)
    scaled_x = jnp.einsum("bts,bsq->btq", scores, V) + x
    out = lin(scaled_x, p["wa"], p["ba"]) + x

    H = hidden_size

    def cell(carry, x_t):
        h, c = carry
        gates = x_t @ p["w_ih"].T + p["b_ih"] + h @ p["w_hh"].T + p["b_hh"]
        i, f, g, o = jnp.split(gates, 4, axis=-1)
        i, f, g, o = jax.nn.sigmoid(i), jax.nn.sigmoid(f), jnp.tanh(g), jax.nn.sigmoid(o)
        c = f * c + i * g
        h = o * jnp.tanh(c)
        return (h, c), None

    B = x.shape[0]
    h0 = jnp.zeros((B, H), jnp.float32)
    c0 = jnp.zeros((B, H), jnp.float32)
    (h_last, _), _ = lax.scan(cell, (h0, c0), jnp.swapaxes(out, 0, 1))
    return h_last @ p["w_fc"].T + p["b_fc"]


# ----------------------------------------------------------------------------
# Main
# ----------------------------------------------------------------------------
if __name__ == "__main__":
    # Module hyperparameters (qkv == input_size is required by the PyTorch
    # forward, since scores @ V is added directly to x).
    B, T = 2, 8
    input_size = 16
    qkv = 16
    hidden_size = 32
    num_layers = 1          # see TODO(synk) above
    output_size = 4

    key = jax.random.PRNGKey(0)
    kx, *kp = jax.random.split(key, 16)
    u = lambda k, shape: jax.random.uniform(k, shape, jnp.float32, -0.1, 0.1)

    x = jax.random.normal(kx, (B, T, input_size), jnp.float32)

    params = {
        "wq": u(kp[0], (qkv, input_size)),  "bq": u(kp[1], (1, qkv)),
        "wk": u(kp[2], (qkv, input_size)),  "bk": u(kp[3], (1, qkv)),
        "wv": u(kp[4], (qkv, input_size)),  "bv": u(kp[5], (1, qkv)),
        "wa": u(kp[6], (input_size, qkv)),  "ba": u(kp[7], (1, input_size)),
        "w_ih": u(kp[8], (4 * hidden_size, input_size)),
        "w_hh": u(kp[9], (4 * hidden_size, hidden_size)),
        "b_ih": u(kp[10], (1, 4 * hidden_size)),
        "b_hh": u(kp[11], (1, 4 * hidden_size)),
        "w_fc": u(kp[12], (output_size, hidden_size)),
        "b_fc": u(kp[13], (1, output_size)),
    }

    out = attentional_lstm_forward(
        x, params, qkv=qkv, hidden_size=hidden_size, output_size=output_size)
    out = jax.block_until_ready(out)

    ref = reference_forward(x, params, qkv=qkv, hidden_size=hidden_size)
    assert out.shape == (B, output_size), out.shape
    # Tolerance accounts for bf16 MXU operands (state/accumulation stay f32)
    # and the EUP approximate reciprocal in the softmax denominator.
    assert jnp.allclose(out, ref, rtol=2e-2, atol=2e-2), (
        f"mismatch: max abs diff {jnp.max(jnp.abs(out - ref))}")

    print("KERNEL_OK")
</pallas_src>

<mosaic_0001>
module attributes {stable_mosaic.version = 11 : i64} {
  func.func @fused_attn_lstm_kernel(%arg0: memref<2x8x16xf32, #tpu.memory_space<vmem>>, %arg1: memref<16x48xbf16, #tpu.memory_space<vmem>>, %arg2: memref<1x48xf32, #tpu.memory_space<vmem>>, %arg3: memref<16x16xbf16, #tpu.memory_space<vmem>>, %arg4: memref<1x16xf32, #tpu.memory_space<vmem>>, %arg5: memref<16x128xbf16, #tpu.memory_space<vmem>>, %arg6: memref<32x128xbf16, #tpu.memory_space<vmem>>, %arg7: memref<1x128xf32, #tpu.memory_space<vmem>>, %arg8: memref<32x4xbf16, #tpu.memory_space<vmem>>, %arg9: memref<1x4xf32, #tpu.memory_space<vmem>>, %arg10: memref<2x4xf32, #tpu.memory_space<vmem>>) attributes {dimension_semantics = [], scalar_prefetch = 0 : i64, scratch_operands = 0 : i64, tpu.core_type = #tpu.core_type<tc>} {
    %c0 = arith.constant 0 : index
    %c0_0 = arith.constant 0 : index
    %c0_1 = arith.constant 0 : index
    %0 = vector.load %arg0[%c0, %c0_0, %c0_1] : memref<2x8x16xf32, #tpu.memory_space<vmem>>, vector<2x8x16xf32>
    %1 = vector.shape_cast %0 : vector<2x8x16xf32> to vector<16x16xf32>
    %2 = arith.truncf %1 : vector<16x16xf32> to vector<16x16xbf16>
    %c0_2 = arith.constant 0 : index
    %c0_3 = arith.constant 0 : index
    %3 = vector.load %arg1[%c0_2, %c0_3] : memref<16x48xbf16, #tpu.memory_space<vmem>>, vector<16x48xbf16>
    %cst = arith.constant dense<0.000000e+00> : vector<16x48xf32>
    %4 = tpu.matmul %2, %3, %cst {dimension_numbers = #tpu.dot_dimension_numbers<[1], [0], [0], [1], [0, 0, 1, 1], [], []>} : vector<16x16xbf16>, vector<16x48xbf16>, vector<16x48xf32> -> vector<16x48xf32>
    %c0_4 = arith.constant 0 : index
    %c0_5 = arith.constant 0 : index
    %5 = vector.load %arg2[%c0_4, %c0_5] : memref<1x48xf32, #tpu.memory_space<vmem>>, vector<1x48xf32>
    %6 = vector.broadcast %5 : vector<1x48xf32> to vector<16x48xf32>
    %7 = arith.addf %4, %6 : vector<16x48xf32>
    %8 = vector.extract_strided_slice %7 {offsets = [0, 0], sizes = [16, 16], strides = [1, 1]} : vector<16x48xf32> to vector<16x16xf32>
    %9 = vector.shape_cast %8 : vector<16x16xf32> to vector<2x8x16xf32>
    %10 = arith.truncf %9 : vector<2x8x16xf32> to vector<2x8x16xbf16>
    %11 = vector.extract_strided_slice %7 {offsets = [0, 16], sizes = [16, 16], strides = [1, 1]} : vector<16x48xf32> to vector<16x16xf32>
    %12 = vector.shape_cast %11 : vector<16x16xf32> to vector<2x8x16xf32>
    %13 = arith.truncf %12 : vector<2x8x16xf32> to vector<2x8x16xbf16>
    %14 = vector.extract_strided_slice %7 {offsets = [0, 32], sizes = [16, 16], strides = [1, 1]} : vector<16x48xf32> to vector<16x16xf32>
    %15 = vector.shape_cast %14 : vector<16x16xf32> to vector<2x8x16xf32>
    %16 = arith.truncf %15 : vector<2x8x16xf32> to vector<2x8x16xbf16>
    "tpu.trace_start"() <{level = 10 : i32, message = "btq,bsq->bts"}> : () -> ()
    %cst_6 = arith.constant dense<0.000000e+00> : vector<2x8x8xf32>
    %17 = tpu.matmul %10, %13, %cst_6 {dimension_numbers = #tpu.dot_dimension_numbers<[2], [2], [1], [1], [0, 0, 0, 1, 1, 1], [0], [0]>} : vector<2x8x16xbf16>, vector<2x8x16xbf16>, vector<2x8x8xf32> -> vector<2x8x8xf32>
    "tpu.trace_stop"() : () -> ()
    %cst_7 = arith.constant 2.500000e-01 : f32
    %18 = vector.broadcast %cst_7 : f32 to vector<2x8x8xf32>
    %19 = arith.mulf %17, %18 : vector<2x8x8xf32>
    %cst_8 = arith.constant dense<0xFF800000> : vector<2x8xf32>
    %20 = vector.multi_reduction <maximumf>, %19, %cst_8 [2] : vector<2x8x8xf32> to vector<2x8xf32>
    %21 = vector.shape_cast %20 : vector<2x8xf32> to vector<2x8x1xf32>
    %22 = vector.broadcast %21 : vector<2x8x1xf32> to vector<2x8x8xf32>
    %23 = arith.subf %19, %22 : vector<2x8x8xf32>
    %24 = math.exp %23 : vector<2x8x8xf32>
    %cst_9 = arith.constant dense<0.000000e+00> : vector<2x8xf32>
    %25 = vector.multi_reduction <add>, %24, %cst_9 [2] : vector<2x8x8xf32> to vector<2x8xf32>
    %26 = vector.shape_cast %25 : vector<2x8xf32> to vector<2x8x1xf32>
    %27 = tpu.reciprocal %26 {approx = true} : vector<2x8x1xf32> -> vector<2x8x1xf32>
    %28 = vector.broadcast %27 : vector<2x8x1xf32> to vector<2x8x8xf32>
    %29 = arith.mulf %24, %28 : vector<2x8x8xf32>
    %30 = arith.truncf %29 : vector<2x8x8xf32> to vector<2x8x8xbf16>
    "tpu.trace_start"() <{level = 10 : i32, message = "bts,bsq->btq"}> : () -> ()
    %cst_10 = arith.constant dense<0.000000e+00> : vector<2x8x16xf32>
    %31 = tpu.matmul %30, %16, %cst_10 {dimension_numbers = #tpu.dot_dimension_numbers<[2], [1], [1], [2], [0, 0, 0, 1, 1, 2], [0], [0]>} : vector<2x8x8xbf16>, vector<2x8x16xbf16>, vector<2x8x16xf32> -> vector<2x8x16xf32>
    "tpu.trace_stop"() : () -> ()
    %32 = arith.addf %31, %0 : vector<2x8x16xf32>
    %33 = vector.shape_cast %32 : vector<2x8x16xf32> to vector<16x16xf32>
    %34 = arith.truncf %33 : vector<16x16xf32> to vector<16x16xbf16>
    %c0_11 = arith.constant 0 : index
    %c0_12 = arith.constant 0 : index
    %35 = vector.load %arg3[%c0_11, %c0_12] : memref<16x16xbf16, #tpu.memory_space<vmem>>, vector<16x16xbf16>
    %cst_13 = arith.constant dense<0.000000e+00> : vector<16x16xf32>
    %36 = tpu.matmul %34, %35, %cst_13 {dimension_numbers = #tpu.dot_dimension_numbers<[1], [0], [0], [1], [0, 0, 1, 1], [], []>} : vector<16x16xbf16>, vector<16x16xbf16>, vector<16x16xf32> -> vector<16x16xf32>
    %c0_14 = arith.constant 0 : index
    %c0_15 = arith.constant 0 : index
    %37 = vector.load %arg4[%c0_14, %c0_15] : memref<1x16xf32, #tpu.memory_space<vmem>>, vector<1x16xf32>
    %38 = vector.broadcast %37 : vector<1x16xf32> to vector<16x16xf32>
    %39 = arith.addf %36, %38 : vector<16x16xf32>
    %40 = arith.addf %39, %1 : vector<16x16xf32>
    %41 = arith.truncf %40 : vector<16x16xf32> to vector<16x16xbf16>
    %c0_16 = arith.constant 0 : index
    %c0_17 = arith.constant 0 : index
    %42 = vector.load %arg5[%c0_16, %c0_17] : memref<16x128xbf16, #tpu.memory_space<vmem>>, vector<16x128xbf16>
    %cst_18 = arith.constant dense<0.000000e+00> : vector<16x128xf32>
    %43 = tpu.matmul %41, %42, %cst_18 {dimension_numbers = #tpu.dot_dimension_numbers<[1], [0], [0], [1], [0, 0, 1, 1], [], []>} : vector<16x16xbf16>, vector<16x128xbf16>, vector<16x128xf32> -> vector<16x128xf32>
    %c0_19 = arith.constant 0 : index
    %c0_20 = arith.constant 0 : index
    %44 = vector.load %arg7[%c0_19, %c0_20] : memref<1x128xf32, #tpu.memory_space<vmem>>, vector<1x128xf32>
    %45 = vector.broadcast %44 : vector<1x128xf32> to vector<16x128xf32>
    %46 = arith.addf %43, %45 : vector<16x128xf32>
    %47 = vector.shape_cast %46 : vector<16x128xf32> to vector<2x8x128xf32>
    %c0_21 = arith.constant 0 : index
    %c0_22 = arith.constant 0 : index
    %48 = vector.load %arg6[%c0_21, %c0_22] : memref<32x128xbf16, #tpu.memory_space<vmem>>, vector<32x128xbf16>
    %cst_23 = arith.constant 0.000000e+00 : f32
    %49 = vector.broadcast %cst_23 : f32 to vector<2x32xf32>
    %cst_24 = arith.constant 0.000000e+00 : f32
    %50 = vector.broadcast %cst_24 : f32 to vector<2x32xf32>
    %51 = vector.extract_strided_slice %47 {offsets = [0, 0, 0], sizes = [2, 1, 128], strides = [1, 1, 1]} : vector<2x8x128xf32> to vector<2x1x128xf32>
    %52 = vector.shape_cast %51 : vector<2x1x128xf32> to vector<2x128xf32>
    %53 = arith.truncf %49 : vector<2x32xf32> to vector<2x32xbf16>
    %cst_25 = arith.constant dense<0.000000e+00> : vector<2x128xf32>
    %54 = tpu.matmul %53, %48, %cst_25 {dimension_numbers = #tpu.dot_dimension_numbers<[1], [0], [0], [1], [0, 0, 1, 1], [], []>} : vector<2x32xbf16>, vector<32x128xbf16>, vector<2x128xf32> -> vector<2x128xf32>
    %55 = arith.addf %52, %54 : vector<2x128xf32>
    %56 = arith.negf %55 : vector<2x128xf32>
    %57 = math.exp %56 : vector<2x128xf32>
    %cst_26 = arith.constant 1.000000e+00 : f32
    %58 = vector.broadcast %cst_26 : f32 to vector<2x128xf32>
    %59 = arith.addf %58, %57 : vector<2x128xf32>
    %60 = arith.divf %58, %59 : vector<2x128xf32>
    %61 = math.tanh %55 : vector<2x128xf32>
    %62 = vector.extract_strided_slice %60 {offsets = [0, 0], sizes = [2, 32], strides = [1, 1]} : vector<2x128xf32> to vector<2x32xf32>
    %63 = vector.extract_strided_slice %60 {offsets = [0, 32], sizes = [2, 32], strides = [1, 1]} : vector<2x128xf32> to vector<2x32xf32>
    %64 = vector.extract_strided_slice %61 {offsets = [0, 64], sizes = [2, 32], strides = [1, 1]} : vector<2x128xf32> to vector<2x32xf32>
    %65 = vector.extract_strided_slice %60 {offsets = [0, 96], sizes = [2, 32], strides = [1, 1]} : vector<2x128xf32> to vector<2x32xf32>
    %66 = arith.mulf %63, %50 : vector<2x32xf32>
    %67 = arith.mulf %62, %64 : vector<2x32xf32>
    %68 = arith.addf %66, %67 : vector<2x32xf32>
    %69 = math.tanh %68 : vector<2x32xf32>
    %70 = arith.mulf %65, %69 : vector<2x32xf32>
    %71 = vector.extract_strided_slice %47 {offsets = [0, 1, 0], sizes = [2, 1, 128], strides = [1, 1, 1]} : vector<2x8x128xf32> to vector<2x1x128xf32>
    %72 = vector.shape_cast %71 : vector<2x1x128xf32> to vector<2x128xf32>
    %73 = arith.truncf %70 : vector<2x32xf32> to vector<2x32xbf16>
    %cst_27 = arith.constant dense<0.000000e+00> : vector<2x128xf32>
    %74 = tpu.matmul %73, %48, %cst_27 {dimension_numbers = #tpu.dot_dimension_numbers<[1], [0], [0], [1], [0, 0, 1, 1], [], []>} : vector<2x32xbf16>, vector<32x128xbf16>, vector<2x128xf32> -> vector<2x128xf32>
    %75 = arith.addf %72, %74 : vector<2x128xf32>
    %76 = arith.negf %75 : vector<2x128xf32>
    %77 = math.exp %76 : vector<2x128xf32>
    %cst_28 = arith.constant 1.000000e+00 : f32
    %78 = vector.broadcast %cst_28 : f32 to vector<2x128xf32>
    %79 = arith.addf %78, %77 : vector<2x128xf32>
    %80 = arith.divf %78, %79 : vector<2x128xf32>
    %81 = math.tanh %75 : vector<2x128xf32>
    %82 = vector.extract_strided_slice %80 {offsets = [0, 0], sizes = [2, 32], strides = [1, 1]} : vector<2x128xf32> to vector<2x32xf32>
    %83 = vector.extract_strided_slice %80 {offsets = [0, 32], sizes = [2, 32], strides = [1, 1]} : vector<2x128xf32> to vector<2x32xf32>
    %84 = vector.extract_strided_slice %81 {offsets = [0, 64], sizes = [2, 32], strides = [1, 1]} : vector<2x128xf32> to vector<2x32xf32>
    %85 = vector.extract_strided_slice %80 {offsets = [0, 96], sizes = [2, 32], strides = [1, 1]} : vector<2x128xf32> to vector<2x32xf32>
    %86 = arith.mulf %83, %68 : vector<2x32xf32>
    %87 = arith.mulf %82, %84 : vector<2x32xf32>
    %88 = arith.addf %86, %87 : vector<2x32xf32>
    %89 = math.tanh %88 : vector<2x32xf32>
    %90 = arith.mulf %85, %89 : vector<2x32xf32>
    %91 = vector.extract_strided_slice %47 {offsets = [0, 2, 0], sizes = [2, 1, 128], strides = [1, 1, 1]} : vector<2x8x128xf32> to vector<2x1x128xf32>
    %92 = vector.shape_cast %91 : vector<2x1x128xf32> to vector<2x128xf32>
    %93 = arith.truncf %90 : vector<2x32xf32> to vector<2x32xbf16>
    %cst_29 = arith.constant dense<0.000000e+00> : vector<2x128xf32>
    %94 = tpu.matmul %93, %48, %cst_29 {dimension_numbers = #tpu.dot_dimension_numbers<[1], [0], [0], [1], [0, 0, 1, 1], [], []>} : vector<2x32xbf16>, vector<32x128xbf16>, vector<2x128xf32> -> vector<2x128xf32>
    %95 = arith.addf %92, %94 : vector<2x128xf32>
    %96 = arith.negf %95 : vector<2x128xf32>
    %97 = math.exp %96 : vector<2x128xf32>
    %cst_30 = arith.constant 1.000000e+00 : f32
    %98 = vector.broadcast %cst_30 : f32 to vector<2x128xf32>
    %99 = arith.addf %98, %97 : vector<2x128xf32>
    %100 = arith.divf %98, %99 : vector<2x128xf32>
    %101 = math.tanh %95 : vector<2x128xf32>
    %102 = vector.extract_strided_slice %100 {offsets = [0, 0], sizes = [2, 32], strides = [1, 1]} : vector<2x128xf32> to vector<2x32xf32>
    %103 = vector.extract_strided_slice %100 {offsets = [0, 32], sizes = [2, 32], strides = [1, 1]} : vector<2x128xf32> to vector<2x32xf32>
    %104 = vector.extract_strided_slice %101 {offsets = [0, 64], sizes = [2, 32], strides = [1, 1]} : vector<2x128xf32> to vector<2x32xf32>
    %105 = vector.extract_strided_slice %100 {offsets = [0, 96], sizes = [2, 32], strides = [1, 1]} : vector<2x128xf32> to vector<2x32xf32>
    %106 = arith.mulf %103, %88 : vector<2x32xf32>
    %107 = arith.mulf %102, %104 : vector<2x32xf32>
    %108 = arith.addf %106, %107 : vector<2x32xf32>
    %109 = math.tanh %108 : vector<2x32xf32>
    %110 = arith.mulf %105, %109 : vector<2x32xf32>
    %111 = vector.extract_strided_slice %47 {offsets = [0, 3, 0], sizes = [2, 1, 128], strides = [1, 1, 1]} : vector<2x8x128xf32> to vector<2x1x128xf32>
    %112 = vector.shape_cast %111 : vector<2x1x128xf32> to vector<2x128xf32>
    %113 = arith.truncf %110 : vector<2x32xf32> to vector<2x32xbf16>
    %cst_31 = arith.constant dense<0.000000e+00> : vector<2x128xf32>
    %114 = tpu.matmul %113, %48, %cst_31 {dimension_numbers = #tpu.dot_dimension_numbers<[1], [0], [0], [1], [0, 0, 1, 1], [], []>} : vector<2x32xbf16>, vector<32x128xbf16>, vector<2x128xf32> -> vector<2x128xf32>
    %115 = arith.addf %112, %114 : vector<2x128xf32>
    %116 = arith.negf %115 : vector<2x128xf32>
    %117 = math.exp %116 : vector<2x128xf32>
    %cst_32 = arith.constant 1.000000e+00 : f32
    %118 = vector.broadcast %cst_32 : f32 to vector<2x128xf32>
    %119 = arith.addf %118, %117 : vector<2x128xf32>
    %120 = arith.divf %118, %119 : vector<2x128xf32>
    %121 = math.tanh %115 : vector<2x128xf32>
    %122 = vector.extract_strided_slice %120 {offsets = [0, 0], sizes = [2, 32], strides = [1, 1]} : vector<2x128xf32> to vector<2x32xf32>
    %123 = vector.extract_strided_slice %120 {offsets = [0, 32], sizes = [2, 32], strides = [1, 1]} : vector<2x128xf32> to vector<2x32xf32>
    %124 = vector.extract_strided_slice %121 {offsets = [0, 64], sizes = [2, 32], strides = [1, 1]} : vector<2x128xf32> to vector<2x32xf32>
    %125 = vector.extract_strided_slice %120 {offsets = [0, 96], sizes = [2, 32], strides = [1, 1]} : vector<2x128xf32> to vector<2x32xf32>
    %126 = arith.mulf %123, %108 : vector<2x32xf32>
    %127 = arith.mulf %122, %124 : vector<2x32xf32>
    %128 = arith.addf %126, %127 : vector<2x32xf32>
    %129 = math.tanh %128 : vector<2x32xf32>
    %130 = arith.mulf %125, %129 : vector<2x32xf32>
    %131 = vector.extract_strided_slice %47 {offsets = [0, 4, 0], sizes = [2, 1, 128], strides = [1, 1, 1]} : vector<2x8x128xf32> to vector<2x1x128xf32>
    %132 = vector.shape_cast %131 : vector<2x1x128xf32> to vector<2x128xf32>
    %133 = arith.truncf %130 : vector<2x32xf32> to vector<2x32xbf16>
    %cst_33 = arith.constant dense<0.000000e+00> : vector<2x128xf32>
    %134 = tpu.matmul %133, %48, %cst_33 {dimension_numbers = #tpu.dot_dimension_numbers<[1], [0], [0], [1], [0, 0, 1, 1], [], []>} : vector<2x32xbf16>, vector<32x128xbf16>, vector<2x128xf32> -> vector<2x128xf32>
    %135 = arith.addf %132, %134 : vector<2x128xf32>
    %136 = arith.negf %135 : vector<2x128xf32>
    %137 = math.exp %136 : vector<2x128xf32>
    %cst_34 = arith.constant 1.000000e+00 : f32
    %138 = vector.broadcast %cst_34 : f32 to vector<2x128xf32>
    %139 = arith.addf %138, %137 : vector<2x128xf32>
    %140 = arith.divf %138, %139 : vector<2x128xf32>
    %141 = math.tanh %135 : vector<2x128xf32>
    %142 = vector.extract_strided_slice %140 {offsets = [0, 0], sizes = [2, 32], strides = [1, 1]} : vector<2x128xf32> to vector<2x32xf32>
    %143 = vector.extract_strided_slice %140 {offsets = [0, 32], sizes = [2, 32], strides = [1, 1]} : vector<2x128xf32> to vector<2x32xf32>
    %144 = vector.extract_strided_slice %141 {offsets = [0, 64], sizes = [2, 32], strides = [1, 1]} : vector<2x128xf32> to vector<2x32xf32>
    %145 = vector.extract_strided_slice %140 {offsets = [0, 96], sizes = [2, 32], strides = [1, 1]} : vector<2x128xf32> to vector<2x32xf32>
    %146 = arith.mulf %143, %128 : vector<2x32xf32>
    %147 = arith.mulf %142, %144 : vector<2x32xf32>
    %148 = arith.addf %146, %147 : vector<2x32xf32>
    %149 = math.tanh %148 : vector<2x32xf32>
    %150 = arith.mulf %145, %149 : vector<2x32xf32>
    %151 = vector.extract_strided_slice %47 {offsets = [0, 5, 0], sizes = [2, 1, 128], strides = [1, 1, 1]} : vector<2x8x128xf32> to vector<2x1x128xf32>
    %152 = vector.shape_cast %151 : vector<2x1x128xf32> to vector<2x128xf32>
    %153 = arith.truncf %150 : vector<2x32xf32> to vector<2x32xbf16>
    %cst_35 = arith.constant dense<0.000000e+00> : vector<2x128xf32>
    %154 = tpu.matmul %153, %48, %cst_35 {dimension_numbers = #tpu.dot_dimension_numbers<[1], [0], [0], [1], [0, 0, 1, 1], [], []>} : vector<2x32xbf16>, vector<32x128xbf16>, vector<2x128xf32> -> vector<2x128xf32>
    %155 = arith.addf %152, %154 : vector<2x128xf32>
    %156 = arith.negf %155 : vector<2x128xf32>
    %157 = math.exp %156 : vector<2x128xf32>
    %cst_36 = arith.constant 1.000000e+00 : f32
    %158 = vector.broadcast %cst_36 : f32 to vector<2x128xf32>
    %159 = arith.addf %158, %157 : vector<2x128xf32>
    %160 = arith.divf %158, %159 : vector<2x128xf32>
    %161 = math.tanh %155 : vector<2x128xf32>
    %162 = vector.extract_strided_slice %160 {offsets = [0, 0], sizes = [2, 32], strides = [1, 1]} : vector<2x128xf32> to vector<2x32xf32>
    %163 = vector.extract_strided_slice %160 {offsets = [0, 32], sizes = [2, 32], strides = [1, 1]} : vector<2x128xf32> to vector<2x32xf32>
    %164 = vector.extract_strided_slice %161 {offsets = [0, 64], sizes = [2, 32], strides = [1, 1]} : vector<2x128xf32> to vector<2x32xf32>
    %165 = vector.extract_strided_slice %160 {offsets = [0, 96], sizes = [2, 32], strides = [1, 1]} : vector<2x128xf32> to vector<2x32xf32>
    %166 = arith.mulf %163, %148 : vector<2x32xf32>
    %167 = arith.mulf %162, %164 : vector<2x32xf32>
    %168 = arith.addf %166, %167 : vector<2x32xf32>
    %169 = math.tanh %168 : vector<2x32xf32>
    %170 = arith.mulf %165, %169 : vector<2x32xf32>
    %171 = vector.extract_strided_slice %47 {offsets = [0, 6, 0], sizes = [2, 1, 128], strides = [1, 1, 1]} : vector<2x8x128xf32> to vector<2x1x128xf32>
    %172 = vector.shape_cast %171 : vector<2x1x128xf32> to vector<2x128xf32>
    %173 = arith.truncf %170 : vector<2x32xf32> to vector<2x32xbf16>
    %cst_37 = arith.constant dense<0.000000e+00> : vector<2x128xf32>
    %174 = tpu.matmul %173, %48, %cst_37 {dimension_numbers = #tpu.dot_dimension_numbers<[1], [0], [0], [1], [0, 0, 1, 1], [], []>} : vector<2x32xbf16>, vector<32x128xbf16>, vector<2x128xf32> -> vector<2x128xf32>
    %175 = arith.addf %172, %174 : vector<2x128xf32>
    %176 = arith.negf %175 : vector<2x128xf32>
    %177 = math.exp %176 : vector<2x128xf32>
    %cst_38 = arith.constant 1.000000e+00 : f32
    %178 = vector.broadcast %cst_38 : f32 to vector<2x128xf32>
    %179 = arith.addf %178, %177 : vector<2x128xf32>
    %180 = arith.divf %178, %179 : vector<2x128xf32>
    %181 = math.tanh %175 : vector<2x128xf32>
    %182 = vector.extract_strided_slice %180 {offsets = [0, 0], sizes = [2, 32], strides = [1, 1]} : vector<2x128xf32> to vector<2x32xf32>
    %183 = vector.extract_strided_slice %180 {offsets = [0, 32], sizes = [2, 32], strides = [1, 1]} : vector<2x128xf32> to vector<2x32xf32>
    %184 = vector.extract_strided_slice %181 {offsets = [0, 64], sizes = [2, 32], strides = [1, 1]} : vector<2x128xf32> to vector<2x32xf32>
    %185 = vector.extract_strided_slice %180 {offsets = [0, 96], sizes = [2, 32], strides = [1, 1]} : vector<2x128xf32> to vector<2x32xf32>
    %186 = arith.mulf %183, %168 : vector<2x32xf32>
    %187 = arith.mulf %182, %184 : vector<2x32xf32>
    %188 = arith.addf %186, %187 : vector<2x32xf32>
    %189 = math.tanh %188 : vector<2x32xf32>
    %190 = arith.mulf %185, %189 : vector<2x32xf32>
    %191 = vector.extract_strided_slice %47 {offsets = [0, 7, 0], sizes = [2, 1, 128], strides = [1, 1, 1]} : vector<2x8x128xf32> to vector<2x1x128xf32>
    %192 = vector.shape_cast %191 : vector<2x1x128xf32> to vector<2x128xf32>
    %193 = arith.truncf %190 : vector<2x32xf32> to vector<2x32xbf16>
    %cst_39 = arith.constant dense<0.000000e+00> : vector<2x128xf32>
    %194 = tpu.matmul %193, %48, %cst_39 {dimension_numbers = #tpu.dot_dimension_numbers<[1], [0], [0], [1], [0, 0, 1, 1], [], []>} : vector<2x32xbf16>, vector<32x128xbf16>, vector<2x128xf32> -> vector<2x128xf32>
    %195 = arith.addf %192, %194 : vector<2x128xf32>
    %196 = arith.negf %195 : vector<2x128xf32>
    %197 = math.exp %196 : vector<2x128xf32>
    %cst_40 = arith.constant 1.000000e+00 : f32
    %198 = vector.broadcast %cst_40 : f32 to vector<2x128xf32>
    %199 = arith.addf %198, %197 : vector<2x128xf32>
    %200 = arith.divf %198, %199 : vector<2x128xf32>
    %201 = math.tanh %195 : vector<2x128xf32>
    %202 = vector.extract_strided_slice %200 {offsets = [0, 0], sizes = [2, 32], strides = [1, 1]} : vector<2x128xf32> to vector<2x32xf32>
    %203 = vector.extract_strided_slice %200 {offsets = [0, 32], sizes = [2, 32], strides = [1, 1]} : vector<2x128xf32> to vector<2x32xf32>
    %204 = vector.extract_strided_slice %201 {offsets = [0, 64], sizes = [2, 32], strides = [1, 1]} : vector<2x128xf32> to vector<2x32xf32>
    %205 = vector.extract_strided_slice %200 {offsets = [0, 96], sizes = [2, 32], strides = [1, 1]} : vector<2x128xf32> to vector<2x32xf32>
    %206 = arith.mulf %203, %188 : vector<2x32xf32>
    %207 = arith.mulf %202, %204 : vector<2x32xf32>
    %208 = arith.addf %206, %207 : vector<2x32xf32>
    %209 = math.tanh %208 : vector<2x32xf32>
    %210 = arith.mulf %205, %209 : vector<2x32xf32>
    %211 = arith.truncf %210 : vector<2x32xf32> to vector<2x32xbf16>
    %c0_41 = arith.constant 0 : index
    %c0_42 = arith.constant 0 : index
    %212 = vector.load %arg8[%c0_41, %c0_42] : memref<32x4xbf16, #tpu.memory_space<vmem>>, vector<32x4xbf16>
    %cst_43 = arith.constant dense<0.000000e+00> : vector<2x4xf32>
    %213 = tpu.matmul %211, %212, %cst_43 {dimension_numbers = #tpu.dot_dimension_numbers<[1], [0], [0], [1], [0, 0, 1, 1], [], []>} : vector<2x32xbf16>, vector<32x4xbf16>, vector<2x4xf32> -> vector<2x4xf32>
    %c0_44 = arith.constant 0 : index
    %c0_45 = arith.constant 0 : index
    %214 = vector.load %arg9[%c0_44, %c0_45] : memref<1x4xf32, #tpu.memory_space<vmem>>, vector<1x4xf32>
    %215 = vector.broadcast %214 : vector<1x4xf32> to vector<2x4xf32>
    %216 = arith.addf %213, %215 : vector<2x4xf32>
    %c0_46 = arith.constant 0 : index
    %c0_47 = arith.constant 0 : index
    %217 = vector.load %arg10[%c0_46, %c0_47] : memref<2x4xf32, #tpu.memory_space<vmem>>, vector<2x4xf32>
    tpu.vector_store %arg10[%c0_46, %c0_47], %216 {strides = array<i32>} : memref<2x4xf32, #tpu.memory_space<vmem>>, vector<2x4xf32>,
    return
  }
}

</mosaic_0001>

<bundles_post_ra>
// kernel: tpu_custom_call.1
= control target key start
LH: loop header
LB: loop body
LE: loop exit
PB: predicated region body
PF: predicated region fallthrough
CT: control target
= control target key end

     0   :  { %15 = vsyncpa [#allocation3], 0  ;;  %s1931_s0 = inlined_call_operand.vmem [shape: f32[2,8,16], index: 0, kind: input, shape index: {}]   ;;  %s1932_s1 = inlined_call_operand.hbm [shape: bf16[16,48], index: 1, kind: input, shape index: {}]   ;;  %s1933_s2 = inlined_call_operand.vmem [shape: f32[1,48], index: 2, kind: input, shape index: {}]   ;;  %s1934_s3 = inlined_call_operand.hbm [shape: bf16[16,16], index: 3, kind: input, shape index: {}]   ;;  %s1935_s4 = inlined_call_operand.vmem [shape: f32[1,16], index: 4, kind: input, shape index: {}]   ;;  %s1936_s5 = inlined_call_operand.hbm [shape: bf16[16,128], index: 5, kind: input, shape index: {}]   ;;  %s1937_s6 = inlined_call_operand.hbm [shape: bf16[32,128], index: 6, kind: input, shape index: {}]   ;;  %s1938_s7 = inlined_call_operand.vmem [shape: f32[1,128], index: 7, kind: input, shape index: {}]   ;;  %s1939_s8 = inlined_call_operand.vmem [shape: bf16[32,4], index: 8, kind: input, shape index: {}]   ;;  %s1940_s9 = inlined_call_operand.vmem [shape: f32[1,4], index: 9, kind: input, shape index: {}]   ;;  %s1941_s10 = inlined_call_operand.hbm [shape: f32[2,4], index: 10, kind: output, shape index: {}]  }
   0x1   :  { %16 = vsyncpa [#allocation6], 0 }
   0x2   :  { %17 = vsyncpa [#allocation9], 0 }
   0x3   :  { %18 = vsyncpa [#allocation4], 0  ;;  %s40_s15 = sshll.u32 %s1934_s3, 4  ;;  %s1645_s16 = smov [#allocation5]   ;;  %s41_s15 = int_to_ptr.hbm [resolvable:$true] %s40_s15 }
   0x4   :  { %s42_s17 = sshll.u32 %s1645_s16, 4  ;;  %s25_s20 = sshll.u32 %s1932_s1, 4  ;;  %s43_s17 = int_to_ptr.vmem [resolvable:$true] %s42_s17  ;;  %s26_s20 = int_to_ptr.hbm [resolvable:$true] %s25_s20 }
   0x5   :  { %s1646_s21 = smov 64   ;;  %s1647_s22 = smov 4  }
   0x6   :  { %48 = dma.hbm_to_vmem [thread:$0]  %s41_s15, 128, %s43_s17, [#allocation6], %s1646_s21, %s1646_s21, %s1647_s22  }
   0x7   :  { %s1648_s23 = smov [#allocation2]   ;;  %s55_s3 = sshll.u32 %s1936_s5, 4  ;;  %s56_s3 = int_to_ptr.hbm [resolvable:$true] %s55_s3 }
   0x8   :  { %s27_s24 = sshll.u32 %s1648_s23, 4  ;;  %s68_s1 = sshll.u32 %s1937_s6, 4  ;;  %s28_s24 = int_to_ptr.vmem [resolvable:$true] %s27_s24  ;;  %s69_s1 = int_to_ptr.hbm [resolvable:$true] %s68_s1 }
   0x9   :  { %33 = dma.hbm_to_vmem [thread:$0]  %s26_s20, 128, %s28_s24, [#allocation3], %s1646_s21, %s1646_s21, %s1647_s22  }
   0xa   :  { %s1649_s29 = smov [#allocation7]   ;;  %s1650_s11 = smov [#allocation8]  }
   0xb   :  { %s57_s30 = sshll.u32 %s1649_s29, 4  ;;  %s70_s12 = sshll.u32 %s1650_s11, 4  ;;  %s58_s30 = int_to_ptr.vmem [resolvable:$true] %s57_s30  ;;  %s71_s12 = int_to_ptr.vmem [resolvable:$true] %s70_s12 }
   0xc   :  { %63 = dma.hbm_to_vmem [thread:$0]  %s56_s3, 128, %s58_s30, [#allocation6], %s1646_s21, %s1646_s21, %s1647_s22  }
   0xd   :  { %76 = dma.hbm_to_vmem [thread:$0]  %s69_s1, 256, %s71_s12, [#allocation9], %s1646_s21, %s1646_s21, %s1647_s22  }
   0xe   :  { %1637 = dma.done.wait [#allocation3], 128  }
   0xf   :  { %1638 = vsyncadd [#allocation3], 4294967168 }
  0x10   :  { %1639 = dma.done.wait [#allocation6], 256  }
  0x11   :  { %1640 = vsyncadd [#allocation6], 4294967040 }
  0x12   :  { %1641 = dma.done.wait [#allocation9], 256  }
  0x13   :  { %1642 = vsyncadd [#allocation9], 4294967040  ;;  %v1359_v0 = vld [vmem:[#allocation2] sm:$0xff]  ;;  %v1739_v2 = vld [vmem:[%s1931_s0 + $0x8] sm:$0xff]  ;;  %vm115_vm0 = vcmask 130048   ;;  %s1652_s17 = smov 96  }
  0x14   :  { %v1734_v1 = vld [vmem:[%s1931_s0] sm:$0xff]  ;;  %126 = vmatpush.bf16.msra.mxu0 %v1359_v0  ;;  %s1651_s0 = smov 112   ;;  %vm215_vm1 = vcmask 1043456   ;;  %vm185_vm2 = vcmask 64512   ;;  %v1360_v41 = vld [vmem:[#allocation5] sm:$0xff]  ;;  %v1361_v51 = vld [vmem:[#allocation7] sm:$0xff] }
  0x15   :  { %v102_v3 = vpack.c.bf16 %v1739_v2, %v1734_v1  ;;  %v1377_v4 = vld [vmem:[%s1933_s2] ss:$0 sm:$0xff]  ;;  %v1362_v59 = vld [vmem:[#allocation8] sm:$0xff]  ;;  %v1653_v60 = vmov 0   ;;  %vm435_vm11 = vcmask 1041409   ;;  %vm331_vm12 = vcmask 261120  }
  0x16   :  { %v1363_v50 = vld [vmem:[#allocation8 + $0x8] sm:$0xff]  ;;  %s1655_s25 = smov [#allocation10]   ;;  %s1288_s28 = sshll.u32 %s1941_s10, 4  ;;  %s1289_s28 = int_to_ptr.hbm [resolvable:$true] %s1288_s28 }
  0x17   :  { %1304 = vmatmul.msk.bf16.vlgmr.msra.gmra.mxu0 %vm115_vm0, %v102_v3  ;;  %v1378_v62 = vld [vmem:[%s1935_s4] ss:$0 sm:$0xff]  ;;  %s1654_s4 = smov 32   ;;  %s1286_s26 = sshll.u32 %s1655_s25, 4  ;;  %s1287_s26 = int_to_ptr.vmem [resolvable:$true] %s1286_s26 }
  0x94   :  { %v128_v5 = vpop.f32.mrf.mxu0 }
  0x95   :  { %v129_v6 = vadd.f32 %v1377_v4, %v128_v5 }
  0x97   :  { %v133_v7 = vpack.c.bf16 %v129_v6, %v129_v6 }
  0x99   :  { %v136_v8 = vunpack.c.l.b16 %v133_v7 }
  0x9b   :  { %v137_v9 = vpack.c.b16 %v136_v8, %v136_v8 }
  0x9c   :  { %v130_v10 = vpop.f32.mrf.mxu0 }
  0x9d   :  { %v131_v11 = vadd.f32 %v1377_v4, %v130_v10  ;;  %138 = vrot.lane.b32.xlu0 %v137_v9, %s1651_s0 }
  0x9f   :  { %v134_v12 = vpack.c.bf16 %v131_v11, %v131_v11 }
  0xa1   :  { %v160_v13 = vunpack.c.l.b16 %v134_v12 }
  0xa3   :  { %v161_v14 = vpack.c.b16 %v160_v13, %v160_v13 }
  0xa5   :  { %162 = vrot.lane.b32.xlu0 %v161_v14, %s1651_s0 }
  0xad   :  { %210 = vrot.lane.b32.xlu0 %v137_v9, %s1652_s17  ;;  %v1379_v9 = vld [vmem:[%s1938_s7] ss:$0 sm:$0xff] }
 0x10f   :  { %v139_v15 = vpop.permute.xlu0 %138 }
 0x110   :  { %v144_v16 = vsel %vm115_vm0, %v139_v15, 0 }
 0x111   :  { %153 = vmatpush.bf16.xpose.msra.mxu1 %v144_v16 }
 0x117   :  { %v163_v17 = vpop.permute.xlu0 %162 }
 0x118   :  { %1305 = vmatmul.msk.bf16.vlgmr.msra.gmra.mxu1 %vm115_vm0, %v133_v7  ;;  %v168_v18 = vsel %vm115_vm0, %v163_v17, 0 }
 0x119   :  { %177 = vmatpush.bf16.xpose.msra.mxu2 %v168_v18  ;;  %308 = vmatpush.bf16.msrb.mxu1 %v1361_v51 }
 0x11d   :  { %677 = vmatpush.bf16.msra.mxu1 %v1363_v50 }
 0x11f   :  { %v211_v19 = vpop.permute.xlu0 %210 }
 0x120   :  { %1306 = vmatmul.msk.bf16.vlgmr.msra.gmra.mxu2 %vm115_vm0, %v134_v12  ;;  %v217_v20 = vsel %vm215_vm1, %v211_v19, 0 }
 0x121   :  { %226 = vmatpush.bf16.msra.mxu3 %v217_v20  ;;  %341 = vmatpush.bf16.msrb.mxu2 %v1363_v50 }
 0x122   :  { %678 = vmatpush.bf16.msra.mxu1 %v1362_v59 }
 0x125   :  { %276 = vmatpush.bf16.msrb.mxu3 %v1360_v41  ;;  %342 = vmatpush.bf16.msrb.mxu2 %v1362_v59 }
 0x129   :  { %792 = vmatpush.bf16.msra.mxu2 %v1363_v50 }
 0x12d   :  { %793 = vmatpush.bf16.msra.mxu2 %v1362_v59 }
 0x130   :  { %343 = vmatmul.bf16.vlgmr.msrb.gmra.mxu2 %v1653_v60 }
 0x195   :  { %v155_v21 = vpop.f32.mrf.mxu1 }
 0x196   :  { %v183_v22 = vmul.f32 0.25, %v155_v21 }
 0x198   :  { %v186_v23 = vsel %vm185_vm2, %v183_v22, -inf }
 0x199   :  { %187 = vmax.xlane.f32.xlu1 %v186_v23 }
 0x19d   :  { %v157_v24 = vpop.f32.mrf.mxu1 }
 0x1a3   :  { %v179_v25 = vpop.f32.mrf.mxu2 }
 0x1a4   :  { %v184_v26 = vmul.f32 0.25, %v179_v25 }
 0x1a6   :  { %v189_v27 = vsel %vm185_vm2, %v184_v26, -inf }
 0x1a7   :  { %190 = vmax.xlane.f32.xlu1 %v189_v27 }
 0x1ab   :  { %v181_v28 = vpop.f32.mrf.mxu2 }
 0x1b3   :  { %v344_v7 = vpop.f32.mrf.mxu2 }
 0x1b4   :  { %v349_v13 = vrot.slane %v344_v7, 1 }
 0x1bb   :  { %v346_v8 = vpop.f32.mrf.mxu2 }
 0x1c0   :  { %232 = vrot.lane.b32.xlu1 %v161_v14, %s1652_s17 }
 0x20c   :  { %v188_v29 = vpop.xlane.xlu1 %187 }
 0x20d   :  { %v192_v30 = vsub.f32 %v183_v22, %v188_v29 }
 0x20f   :  { %v194_v31 = vmul.f32 1.442695, %v192_v30 }
 0x211   :  { %1381 = vpow2.f32 %v194_v31 }
 0x217   :  { %v1382_v32 = vpop.eup %1381 }
 0x218   :  { %v198_v33 = vsel %vm185_vm2, %v1382_v32, 0.0 }
 0x219   :  { %199 = vadd.xlane.f32.xlu2 %v198_v33 }
 0x21a   :  { %v191_v34 = vpop.xlane.xlu1 %190 }
 0x21b   :  { %v193_v35 = vsub.f32 %v184_v26, %v191_v34 }
 0x21d   :  { %v196_v36 = vmul.f32 1.442695, %v193_v35 }
 0x21f   :  { %1383 = vpow2.f32 %v196_v36 }
 0x225   :  { %v1384_v37 = vpop.eup %1383 }
 0x226   :  { %v201_v38 = vsel %vm185_vm2, %v1384_v37, 0.0 }
 0x227   :  { %202 = vadd.xlane.f32.xlu2 %v201_v38 }
 0x232   :  { %v233_v39 = vpop.permute.xlu1 %232 }
 0x233   :  { %v238_v40 = vsel %vm215_vm1, %v233_v39, 0 }
 0x234   :  { %247 = vmatpush.bf16.msrb.mxu0 %v238_v40 }
 0x238   :  { %449 = vmatpush.bf16.msra.mxu0 %v1363_v50 }
 0x23c   :  { %450 = vmatpush.bf16.msra.mxu0 %v1362_v59 }
 0x28c   :  { %v200_v42 = vpop.xlane.xlu2 %199 }
 0x28d   :  { %1385 = vrcp.f32 %v200_v42 }
 0x293   :  { %v1386_v43 = vpop.eup %1385 }
 0x294   :  { %v206_v44 = vmul.f32 %v1386_v43, %v1382_v32 }
 0x296   :  { %v208_v45 = vpack.c.bf16 %v206_v44, %v206_v44 }
 0x298   :  { %1307 = vmatmul.msk.bf16.vlgmr.msra.gmra.mxu3 %vm185_vm2, %v208_v45 }
 0x299   :  { %562 = vmatpush.bf16.msra.mxu3 %v1363_v50 }
 0x29a   :  { %v203_v46 = vpop.xlane.xlu2 %202 }
 0x29b   :  { %1387 = vrcp.f32 %v203_v46 }
 0x29d   :  { %563 = vmatpush.bf16.msra.mxu3 %v1362_v59 }
 0x2a1   :  { %v1388_v47 = vpop.eup %1387 }
 0x2a2   :  { %v207_v48 = vmul.f32 %v1388_v47, %v1384_v37 }
 0x2a4   :  { %v209_v49 = vpack.c.bf16 %v207_v48, %v207_v48 }
 0x2a6   :  { %1308 = vmatmul.msk.bf16.vlgmr.msrb.gmra.mxu0 %vm185_vm2, %v209_v49 }
 0x2a7   :  { %907 = vmatpush.bf16.msrb.mxu0 %v1363_v50 }
 0x2ab   :  { %908 = vmatpush.bf16.msrb.mxu0 %v1362_v59 }
 0x31b   :  { %v228_v52 = vpop.f32.mrf.mxu3 }
 0x31c   :  { %v229_v55 = vadd.f32 %v228_v52, %v1734_v1 }
 0x323   :  { %v230_v53 = vpop.f32.mrf.mxu3  ;;  %v249_v54 = vpop.f32.mrf.mxu0 }
 0x324   :  { %v250_v56 = vadd.f32 %v249_v54, %v1739_v2 }
 0x326   :  { %v253_v57 = vpack.c.bf16 %v250_v56, %v229_v55 }
 0x328   :  { %1313 = vmatmul.msk.bf16.vlgmr.msrb.gmra.mxu3 %vm115_vm0, %v253_v57 }
 0x329   :  { %1022 = vmatpush.bf16.msrb.mxu3 %v1363_v50 }
 0x32b   :  { %v251_v58 = vpop.f32.mrf.mxu0 }
 0x32d   :  { %1023 = vmatpush.bf16.msrb.mxu3 %v1362_v59 }
 0x3ab   :  { %v278_v61 = vpop.f32.mrf.mxu3 }
 0x3ac   :  { %v279_v63 = vadd.f32 %v1378_v62, %v278_v61 }
 0x3ae   :  { %v283_v4 = vadd.f32 %v279_v63, %v1734_v1 }
 0x3b3   :  { %v280_v0 = vpop.f32.mrf.mxu3 }
 0x3b4   :  { %v281_v3 = vadd.f32 %v1378_v62, %v280_v0 }
 0x3b6   :  { %v284_v5 = vadd.f32 %v281_v3, %v1739_v2 }
 0x3b8   :  { %v285_v6 = vpack.c.bf16 %v284_v5, %v283_v4 }
 0x3ba   :  { %1318 = vmatmul.msk.bf16.vlgmr.msrb.gmra.mxu1 %vm115_vm0, %v285_v6 }
 0x3bb   :  { %1137 = vmatpush.bf16.msrb.mxu1 %v1363_v50 }
 0x3bf   :  { %1138 = vmatpush.bf16.msrb.mxu1 %v1362_v59 }
 0x437   :  { %v310_v10 = vpop.f32.mrf.mxu1 }
 0x438   :  { %v1771_v11 = vadd.f32 %v1379_v9, %v310_v10 }
 0x43a   :  { %v352_v12 = vadd.f32 %v344_v7, %v1771_v11 }
 0x43c   :  { %1389 = vtanh.f32 %v352_v12  ;;  %v1327_v20 = vmul.f32 -1.442695, %v352_v12 }
 0x43f   :  { %v312_v1 = vpop.f32.mrf.mxu1 }
 0x440   :  { %v1774_v2 = vadd.f32 %v1379_v9, %v312_v1 }
 0x442   :  { %v1390_v14 = vpop.eup %1389  ;;  %v353_v15 = vadd.f32 %v349_v13, %v1774_v2 }
 0x443   :  { %398 = vrot.lane.b32.xlu0 %v1390_v14, %s1646_s21 }
 0x444   :  { %1391 = vtanh.f32 %v353_v15  ;;  %v1328_v17 = vmul.f32 -1.442695, %v353_v15 }
 0x446   :  { %1393 = vpow2.f32 %v1328_v17 }
 0x44a   :  { %v1392_v16 = vpop.eup %1391 }
 0x44b   :  { %400 = vrot.lane.b32.xlu2 %v1392_v16, %s1646_s21 }
 0x44c   :  { %v1394_v18 = vpop.eup %1393 }
 0x44d   :  { %v361_v19 = vadd.f32 1.0, %v1394_v18 }
 0x44f   :  { %1395 = vrcp.f32 %v361_v19  ;;  %v388_v29 = vand.u32 2147483648, %v361_v19  ;;  %vm382_vm4 = vweird.f32 %v361_v19  ;;  %v386_v30 = vand.u32 2147483647, %v361_v19 }
 0x450   :  { %1397 = vpow2.f32 %v1327_v20 }
 0x451   :  { %v389_v33 = vor.u32 1.1754944e-38, %v388_v29  ;;  %vm387_vm6 = vcmp.eq.f32.partialorder %v386_v30, 8.507059e+37 }
 0x455   :  { %v1396_v21 = vpop.eup %1395 }
 0x456   :  { %v1398_v22 = vpop.eup %1397  ;;  %v378_v23 = vmul.f32 %v1396_v21, %v361_v19  ;;  %vm383_vm3 = vweird.f32 %v1396_v21 }
 0x457   :  { %v360_v24 = vadd.f32 1.0, %v1398_v22  ;;  %vm384_vm5 = vmor %vm382_vm4, %vm383_vm3 }
 0x458   :  { %v379_v25 = vsub.f32 1.0, %v378_v23 }
 0x459   :  { %1399 = vrcp.f32 %v360_v24  ;;  %v373_v40 = vand.u32 2147483648, %v360_v24  ;;  %vm367_vm8 = vweird.f32 %v360_v24  ;;  %v371_v41 = vand.u32 2147483647, %v360_v24 }
 0x45a   :  { %v380_v26 = vmul.f32 %v1396_v21, %v379_v25 }
 0x45b   :  { %v374_v43 = vor.u32 1.1754944e-38, %v373_v40  ;;  %vm372_vm10 = vcmp.eq.f32.partialorder %v371_v41, 8.507059e+37 }
 0x45c   :  { %v381_v27 = vadd.f32 %v1396_v21, %v380_v26 }
 0x45e   :  { %v385_v31 = vsel %vm384_vm5, %v1396_v21, %v381_v27 }
 0x45f   :  { %v1400_v28 = vpop.eup %1399  ;;  %v390_v35 = vsel %vm387_vm6, %v389_v33, %v385_v31 }
 0x460   :  { %v363_v32 = vmul.f32 %v1400_v28, %v360_v24  ;;  %vm368_vm7 = vweird.f32 %v1400_v28  ;;  %v395_v47 = vmul.f32 0.0, %v390_v35 }
 0x461   :  { %vm369_vm9 = vmor %vm367_vm8, %vm368_vm7 }
 0x462   :  { %v364_v37 = vsub.f32 1.0, %v363_v32 }
 0x464   :  { %v365_v38 = vmul.f32 %v1400_v28, %v364_v37 }
 0x466   :  { %v366_v39 = vadd.f32 %v1400_v28, %v365_v38 }
 0x468   :  { %v370_v42 = vsel %vm369_vm9, %v1400_v28, %v366_v39 }
 0x469   :  { %v375_v45 = vsel %vm372_vm10, %v374_v43, %v370_v42 }
 0x46a   :  { %v394_v51 = vmul.f32 0.0, %v375_v45 }
 0x4a5   :  { %v401_v34 = vpop.permute.xlu2 %400 }
 0x4a6   :  { %v405_v36 = vmul.f32 %v401_v34, %v390_v35 }
 0x4a8   :  { %410 = vrot.lane.b32.xlu0 %v405_v36, %s1654_s4 }
 0x4b5   :  { %v399_v44 = vpop.permute.xlu0 %398 }
 0x4b6   :  { %v404_v46 = vmul.f32 %v399_v44, %v375_v45 }
 0x4b8   :  { %408 = vrot.lane.b32.xlu0 %v404_v46, %s1654_s4 }
 0x51a   :  { %v411_v48 = vpop.permute.xlu0 %410 }
 0x51b   :  { %v1781_v49 = vadd.f32 %v411_v48, %v395_v47 }
 0x51d   :  { %1401 = vtanh.f32 %v1781_v49  ;;  %v505_v42 = vrot.slane %v1781_v49, 7 }
 0x523   :  { %v1402_v50 = vpop.eup %1401 }
 0x524   :  { %422 = vrot.lane.b32.xlu2 %v1402_v50, %s1646_s21 }
 0x52a   :  { %v409_v52 = vpop.permute.xlu0 %408 }
 0x52b   :  { %v1785_v53 = vadd.f32 %v409_v52, %v394_v51 }
 0x52d   :  { %1403 = vtanh.f32 %v1785_v53  ;;  %v504_v44 = vrot.slane %v1785_v53, 7 }
 0x533   :  { %v1404_v54 = vpop.eup %1403 }
 0x534   :  { %420 = vrot.lane.b32.xlu1 %v1404_v54, %s1646_s21 }
 0x57e   :  { %v423_v55 = vpop.permute.xlu2 %422 }
 0x57f   :  { %v427_v56 = vmul.f32 %v423_v55, %v390_v35 }
 0x581   :  { %v429_v57 = vpack.c.bf16 %v427_v56, %v427_v56 }
 0x583   :  { %v433_v59 = vunpack.c.l.b16 %v429_v57 }
 0x585   :  { %v434_v62 = vrot.slane %v433_v59, 7 }
 0x5a6   :  { %v421_v58 = vpop.permute.xlu1 %420 }
 0x5a7   :  { %v426_v60 = vmul.f32 %v421_v58, %v375_v45 }
 0x5a9   :  { %v428_v61 = vpack.c.bf16 %v426_v60, %v426_v60 }
 0x5ab   :  { %v432_v63 = vunpack.c.l.b16 %v428_v61 }
 0x5ad   :  { %v436_v0 = vsel %vm435_vm11, %v434_v62, %v432_v63 }
 0x5ae   :  { %v437_v3 = vpack.c.b16 %v436_v0, %v436_v0 }
 0x5b0   :  { %438 = vrot.lane.b32.xlu0 %v437_v3, %s1654_s4 }
 0x622   :  { %v439_v4 = vpop.permute.xlu0 %438 }
 0x623   :  { %1329 = vmatmul.msk.bf16.vlgmr.msra.gmra.mxu0 %vm331_vm12, %v439_v4 }
 0x6a0   :  { %v452_v5 = vpop.f32.mrf.mxu0 }
 0x6a1   :  { %v457_v6 = vrot.slane %v452_v5, 7  ;;  %v461_v7 = vadd.f32 %v452_v5, %v1774_v2 }
 0x6a3   :  { %v460_v8 = vadd.f32 %v457_v6, %v1771_v11  ;;  %1405 = vtanh.f32 %v461_v7  ;;  %v1331_v15 = vmul.f32 -1.442695, %v461_v7 }
 0x6a5   :  { %1407 = vtanh.f32 %v460_v8  ;;  %v1330_v1 = vmul.f32 -1.442695, %v460_v8 }
 0x6a7   :  { %1409 = vpow2.f32 %v1330_v1 }
 0x6a8   :  { %v454_v9 = vpop.f32.mrf.mxu0 }
 0x6a9   :  { %v1406_v10 = vpop.eup %1405 }
 0x6aa   :  { %514 = vrot.lane.b32.xlu1 %v1406_v10, %s1646_s21 }
 0x6ab   :  { %v1408_v12 = vpop.eup %1407 }
 0x6ac   :  { %512 = vrot.lane.b32.xlu2 %v1408_v12, %s1646_s21 }
 0x6ad   :  { %v1410_v13 = vpop.eup %1409 }
 0x6ae   :  { %v468_v14 = vadd.f32 1.0, %v1410_v13 }
 0x6b0   :  { %1411 = vrcp.f32 %v468_v14  ;;  %v481_v23 = vand.u32 2147483648, %v468_v14  ;;  %vm475_vm14 = vweird.f32 %v468_v14  ;;  %v479_v24 = vand.u32 2147483647, %v468_v14 }
 0x6b1   :  { %1413 = vpow2.f32 %v1331_v15 }
 0x6b2   :  { %v482_v26 = vor.u32 1.1754944e-38, %v481_v23  ;;  %vm480_vm0 = vcmp.eq.f32.partialorder %v479_v24, 8.507059e+37 }
 0x6b6   :  { %v1412_v16 = vpop.eup %1411 }
 0x6b7   :  { %v471_v17 = vmul.f32 %v1412_v16, %v468_v14  ;;  %v1414_v19 = vpop.eup %1413  ;;  %vm476_vm13 = vweird.f32 %v1412_v16 }
 0x6b8   :  { %v469_v20 = vadd.f32 1.0, %v1414_v19  ;;  %vm477_vm15 = vmor %vm475_vm14, %vm476_vm13 }
 0x6b9   :  { %v472_v18 = vsub.f32 1.0, %v471_v17 }
 0x6ba   :  { %1415 = vrcp.f32 %v469_v20  ;;  %v496_v35 = vand.u32 2147483648, %v469_v20  ;;  %vm490_vm2 = vweird.f32 %v469_v20  ;;  %v494_v36 = vand.u32 2147483647, %v469_v20 }
 0x6bb   :  { %v473_v21 = vmul.f32 %v1412_v16, %v472_v18 }
 0x6bc   :  { %v497_v38 = vor.u32 1.1754944e-38, %v496_v35  ;;  %vm495_vm4 = vcmp.eq.f32.partialorder %v494_v36, 8.507059e+37 }
 0x6bd   :  { %v474_v22 = vadd.f32 %v1412_v16, %v473_v21 }
 0x6bf   :  { %v478_v25 = vsel %vm477_vm15, %v1412_v16, %v474_v22 }
 0x6c0   :  { %v1416_v27 = vpop.eup %1415  ;;  %v483_v29 = vsel %vm480_vm0, %v482_v26, %v478_v25 }
 0x6c1   :  { %v486_v31 = vmul.f32 %v1416_v27, %v469_v20  ;;  %vm491_vm1 = vweird.f32 %v1416_v27  ;;  %v508_v47 = vmul.f32 %v504_v44, %v483_v29 }
 0x6c2   :  { %vm492_vm3 = vmor %vm490_vm2, %vm491_vm1 }
 0x6c3   :  { %v487_v32 = vsub.f32 1.0, %v486_v31 }
 0x6c5   :  { %v488_v33 = vmul.f32 %v1416_v27, %v487_v32 }
 0x6c7   :  { %v489_v34 = vadd.f32 %v1416_v27, %v488_v33 }
 0x6c9   :  { %v493_v37 = vsel %vm492_vm3, %v1416_v27, %v489_v34 }
 0x6ca   :  { %v498_v40 = vsel %vm495_vm4, %v497_v38, %v493_v37 }
 0x6cb   :  { %v509_v43 = vmul.f32 %v505_v42, %v498_v40 }
 0x706   :  { %v513_v28 = vpop.permute.xlu2 %512 }
 0x707   :  { %v518_v30 = vmul.f32 %v513_v28, %v483_v29 }
 0x709   :  { %522 = vrot.lane.b32.xlu0 %v518_v30, %s1654_s4 }
 0x71c   :  { %v515_v39 = vpop.permute.xlu1 %514 }
 0x71d   :  { %v519_v41 = vmul.f32 %v515_v39, %v498_v40 }
 0x71f   :  { %524 = vrot.lane.b32.xlu2 %v519_v41, %s1654_s4 }
 0x779   :  { %v525_v45 = vpop.permute.xlu2 %524 }
 0x77a   :  { %v1800_v46 = vadd.f32 %v525_v45, %v509_v43 }
 0x77b   :  { %v523_v48 = vpop.permute.xlu0 %522 }
 0x77c   :  { %1417 = vtanh.f32 %v1800_v46  ;;  %v1803_v50 = vadd.f32 %v523_v48, %v508_v47  ;;  %v619_v45 = vrot.slane %v1800_v46, 7 }
 0x77e   :  { %1419 = vtanh.f32 %v1803_v50 }
 0x782   :  { %v1418_v51 = vpop.eup %1417 }
 0x783   :  { %536 = vrot.lane.b32.xlu0 %v1418_v51, %s1646_s21 }
 0x784   :  { %v1420_v52 = vpop.eup %1419 }
 0x785   :  { %534 = vrot.lane.b32.xlu1 %v1420_v52, %s1646_s21 }
 0x7f5   :  { %v537_v49 = vpop.permute.xlu0 %536 }
 0x7f6   :  { %v541_v54 = vmul.f32 %v537_v49, %v498_v40  ;;  %v618_v40 = vrot.slane %v1803_v50, 7 }
 0x7f7   :  { %v535_v53 = vpop.permute.xlu1 %534 }
 0x7f8   :  { %v540_v55 = vmul.f32 %v535_v53, %v483_v29  ;;  %v543_v56 = vpack.c.bf16 %v541_v54, %v541_v54 }
 0x7fa   :  { %v542_v57 = vpack.c.bf16 %v540_v55, %v540_v55  ;;  %v547_v59 = vunpack.c.l.b16 %v543_v56 }
 0x7fc   :  { %v546_v58 = vunpack.c.l.b16 %v542_v57 }
 0x7fe   :  { %v548_v60 = vrot.slane %v546_v58, 1 }
 0x800   :  { %v549_v61 = vsel %vm435_vm11, %v547_v59, %v548_v60 }
 0x801   :  { %v550_v62 = vpack.c.b16 %v549_v61, %v549_v61 }
 0x803   :  { %551 = vrot.lane.b32.xlu2 %v550_v62, %s1654_s4 }
 0x85d   :  { %v552_v63 = vpop.permute.xlu2 %551 }
 0x85e   :  { %1332 = vmatmul.msk.bf16.vlgmr.msra.gmra.mxu3 %vm331_vm12, %v552_v63 }
 0x8e1   :  { %v565_v0 = vpop.f32.mrf.mxu3 }
 0x8e2   :  { %v570_v3 = vrot.slane %v565_v0, 6  ;;  %v571_v4 = vrot.slane %v565_v0, 7 }
 0x8e4   :  { %v574_v5 = vadd.f32 %v570_v3, %v1771_v11  ;;  %v575_v6 = vadd.f32 %v571_v4, %v1774_v2 }
 0x8e6   :  { %1421 = vtanh.f32 %v574_v5  ;;  %v1333_v10 = vmul.f32 -1.442695, %v574_v5  ;;  %v1334_v12 = vmul.f32 -1.442695, %v575_v6 }
 0x8e7   :  { %1423 = vtanh.f32 %v575_v6 }
 0x8e8   :  { %1425 = vpow2.f32 %v1333_v10 }
 0x8e9   :  { %v567_v7 = vpop.f32.mrf.mxu3  ;;  %1427 = vpow2.f32 %v1334_v12 }
 0x8ec   :  { %v1422_v8 = vpop.eup %1421 }
 0x8ed   :  { %v1424_v9 = vpop.eup %1423  ;;  %626 = vrot.lane.b32.xlu1 %v1422_v8, %s1646_s21 }
 0x8ee   :  { %628 = vrot.lane.b32.xlu0 %v1424_v9, %s1646_s21  ;;  %v1426_v1 = vpop.eup %1425 }
 0x8ef   :  { %v1428_v13 = vpop.eup %1427  ;;  %v582_v14 = vadd.f32 1.0, %v1426_v1 }
 0x8f0   :  { %v583_v15 = vadd.f32 1.0, %v1428_v13 }
 0x8f1   :  { %1429 = vrcp.f32 %v582_v14  ;;  %v595_v26 = vand.u32 2147483648, %v582_v14  ;;  %vm589_vm7 = vweird.f32 %v582_v14  ;;  %v593_v28 = vand.u32 2147483647, %v582_v14 }
 0x8f2   :  { %1431 = vrcp.f32 %v583_v15  ;;  %v610_v27 = vand.u32 2147483648, %v583_v15  ;;  %vm604_vm8 = vweird.f32 %v583_v15  ;;  %v608_v29 = vand.u32 2147483647, %v583_v15 }
 0x8f3   :  { %v596_v32 = vor.u32 1.1754944e-38, %v595_v26  ;;  %vm594_vm13 = vcmp.eq.f32.partialorder %v593_v28, 8.507059e+37 }
 0x8f4   :  { %v611_v33 = vor.u32 1.1754944e-38, %v610_v27  ;;  %vm609_vm14 = vcmp.eq.f32.partialorder %v608_v29, 8.507059e+37 }
 0x8f7   :  { %v1430_v16 = vpop.eup %1429 }
 0x8f8   :  { %v1432_v17 = vpop.eup %1431  ;;  %v585_v18 = vmul.f32 %v1430_v16, %v582_v14  ;;  %vm590_vm5 = vweird.f32 %v1430_v16 }
 0x8f9   :  { %v600_v19 = vmul.f32 %v1432_v17, %v583_v15  ;;  %vm605_vm6 = vweird.f32 %v1432_v17  ;;  %vm591_vm9 = vmor %vm589_vm7, %vm590_vm5 }
 0x8fa   :  { %v586_v20 = vsub.f32 1.0, %v585_v18  ;;  %vm606_vm10 = vmor %vm604_vm8, %vm605_vm6 }
 0x8fb   :  { %v601_v21 = vsub.f32 1.0, %v600_v19 }
 0x8fc   :  { %v587_v22 = vmul.f32 %v1430_v16, %v586_v20 }
 0x8fd   :  { %v602_v23 = vmul.f32 %v1432_v17, %v601_v21 }
 0x8fe   :  { %v588_v24 = vadd.f32 %v1430_v16, %v587_v22 }
 0x8ff   :  { %v603_v25 = vadd.f32 %v1432_v17, %v602_v23 }
 0x900   :  { %v592_v30 = vsel %vm591_vm9, %v1430_v16, %v588_v24 }
 0x901   :  { %v607_v31 = vsel %vm606_vm10, %v1432_v17, %v603_v25  ;;  %v597_v35 = vsel %vm594_vm13, %v596_v32, %v592_v30 }
 0x902   :  { %v612_v37 = vsel %vm609_vm14, %v611_v33, %v607_v31  ;;  %v622_v41 = vmul.f32 %v618_v40, %v597_v35 }
 0x903   :  { %v623_v47 = vmul.f32 %v619_v45, %v612_v37 }
 0x95f   :  { %v627_v34 = vpop.permute.xlu1 %626 }
 0x960   :  { %v629_v36 = vpop.permute.xlu0 %628  ;;  %v632_v38 = vmul.f32 %v627_v34, %v597_v35 }
 0x961   :  { %v633_v39 = vmul.f32 %v629_v36, %v612_v37 }
 0x962   :  { %636 = vrot.lane.b32.xlu2 %v632_v38, %s1654_s4 }
 0x963   :  { %638 = vrot.lane.b32.xlu1 %v633_v39, %s1654_s4 }
 0x9bc   :  { %v637_v42 = vpop.permute.xlu2 %636 }
 0x9bd   :  { %v1818_v43 = vadd.f32 %v637_v42, %v622_v41 }
 0x9bf   :  { %1433 = vtanh.f32 %v1818_v43  ;;  %v733_v45 = vrot.slane %v1818_v43, 7 }
 0x9c5   :  { %v1434_v44 = vpop.eup %1433 }
 0x9c6   :  { %648 = vrot.lane.b32.xlu0 %v1434_v44, %s1646_s21 }
 0x9d5   :  { %v639_v48 = vpop.permute.xlu1 %638 }
 0x9d6   :  { %v1823_v51 = vadd.f32 %v639_v48, %v623_v47 }
 0x9d8   :  { %1435 = vtanh.f32 %v1823_v51  ;;  %v734_v39 = vrot.slane %v1823_v51, 7 }
 0x9de   :  { %v1436_v52 = vpop.eup %1435 }
 0x9df   :  { %650 = vrot.lane.b32.xlu2 %v1436_v52, %s1646_s21 }
 0xa38   :  { %v649_v50 = vpop.permute.xlu0 %648 }
 0xa39   :  { %v651_v49 = vpop.permute.xlu2 %650  ;;  %v654_v54 = vmul.f32 %v649_v50, %v597_v35 }
 0xa3a   :  { %v655_v53 = vmul.f32 %v651_v49, %v612_v37 }
 0xa3b   :  { %v656_v55 = vpack.c.bf16 %v654_v54, %v654_v54 }
 0xa3c   :  { %v657_v56 = vpack.c.bf16 %v655_v53, %v655_v53 }
 0xa3d   :  { %v660_v57 = vunpack.c.l.b16 %v656_v55 }
 0xa3e   :  { %v661_v58 = vunpack.c.l.b16 %v657_v56 }
 0xa3f   :  { %v662_v59 = vrot.slane %v660_v57, 2 }
 0xa40   :  { %v663_v60 = vrot.slane %v661_v58, 1 }
 0xa42   :  { %v664_v46 = vsel %vm435_vm11, %v663_v60, %v662_v59 }
 0xa43   :  { %v665_v61 = vpack.c.b16 %v664_v46, %v664_v46 }
 0xa45   :  { %666 = vrot.lane.b32.xlu1 %v665_v61, %s1654_s4 }
 0xab7   :  { %v667_v62 = vpop.permute.xlu1 %666 }
 0xab8   :  { %1335 = vmatmul.msk.bf16.vlgmr.msra.gmra.mxu1 %vm331_vm12, %v667_v62 }
 0xb35   :  { %v680_v63 = vpop.f32.mrf.mxu1 }
 0xb36   :  { %v685_v0 = vrot.slane %v680_v63, 5  ;;  %v686_v3 = vrot.slane %v680_v63, 6 }
 0xb38   :  { %v689_v4 = vadd.f32 %v685_v0, %v1771_v11  ;;  %v690_v5 = vadd.f32 %v686_v3, %v1774_v2 }
 0xb3a   :  { %1437 = vtanh.f32 %v689_v4  ;;  %v1337_v9 = vmul.f32 -1.442695, %v690_v5  ;;  %v1336_v13 = vmul.f32 -1.442695, %v689_v4 }
 0xb3b   :  { %1439 = vtanh.f32 %v690_v5 }
 0xb3c   :  { %1441 = vpow2.f32 %v1337_v9 }
 0xb3d   :  { %v682_v6 = vpop.f32.mrf.mxu1 }
 0xb40   :  { %v1438_v7 = vpop.eup %1437 }
 0xb41   :  { %v1440_v8 = vpop.eup %1439  ;;  %741 = vrot.lane.b32.xlu0 %v1438_v7, %s1646_s21 }
 0xb42   :  { %743 = vrot.lane.b32.xlu2 %v1440_v8, %s1646_s21  ;;  %v1442_v10 = vpop.eup %1441 }
 0xb43   :  { %v698_v12 = vadd.f32 1.0, %v1442_v10 }
 0xb45   :  { %1443 = vrcp.f32 %v698_v12  ;;  %v725_v20 = vand.u32 2147483648, %v698_v12  ;;  %vm719_vm0 = vweird.f32 %v698_v12  ;;  %v723_v21 = vand.u32 2147483647, %v698_v12 }
 0xb46   :  { %1445 = vpow2.f32 %v1336_v13 }
 0xb47   :  { %v726_v23 = vor.u32 1.1754944e-38, %v725_v20  ;;  %vm724_vm2 = vcmp.eq.f32.partialorder %v723_v21, 8.507059e+37 }
 0xb4b   :  { %v1444_v1 = vpop.eup %1443 }
 0xb4c   :  { %v715_v14 = vmul.f32 %v1444_v1, %v698_v12  ;;  %v1446_v16 = vpop.eup %1445  ;;  %vm720_vm15 = vweird.f32 %v1444_v1 }
 0xb4d   :  { %v697_v18 = vadd.f32 1.0, %v1446_v16  ;;  %vm721_vm1 = vmor %vm719_vm0, %vm720_vm15 }
 0xb4e   :  { %v716_v15 = vsub.f32 1.0, %v715_v14 }
 0xb4f   :  { %1447 = vrcp.f32 %v697_v18  ;;  %v710_v32 = vand.u32 2147483648, %v697_v18  ;;  %vm704_vm4 = vweird.f32 %v697_v18  ;;  %v708_v33 = vand.u32 2147483647, %v697_v18 }
 0xb50   :  { %v717_v17 = vmul.f32 %v1444_v1, %v716_v15 }
 0xb51   :  { %v711_v35 = vor.u32 1.1754944e-38, %v710_v32  ;;  %vm709_vm6 = vcmp.eq.f32.partialorder %v708_v33, 8.507059e+37 }
 0xb52   :  { %v718_v19 = vadd.f32 %v1444_v1, %v717_v17 }
 0xb54   :  { %v722_v22 = vsel %vm721_vm1, %v1444_v1, %v718_v19 }
 0xb55   :  { %v727_v25 = vsel %vm724_vm2, %v726_v23, %v722_v22  ;;  %v1448_v26 = vpop.eup %1447 }
 0xb56   :  { %v700_v28 = vmul.f32 %v1448_v26, %v697_v18  ;;  %vm705_vm3 = vweird.f32 %v1448_v26  ;;  %v738_v40 = vmul.f32 %v734_v39, %v727_v25 }
 0xb57   :  { %vm706_vm5 = vmor %vm704_vm4, %vm705_vm3 }
 0xb58   :  { %v701_v29 = vsub.f32 1.0, %v700_v28 }
 0xb5a   :  { %v702_v30 = vmul.f32 %v1448_v26, %v701_v29 }
 0xb5c   :  { %v703_v31 = vadd.f32 %v1448_v26, %v702_v30 }
 0xb5e   :  { %v707_v34 = vsel %vm706_vm5, %v1448_v26, %v703_v31 }
 0xb5f   :  { %v712_v37 = vsel %vm709_vm6, %v711_v35, %v707_v34 }
 0xb60   :  { %v737_v47 = vmul.f32 %v733_v45, %v712_v37 }
 0xb9c   :  { %v744_v24 = vpop.permute.xlu2 %743 }
 0xb9d   :  { %v748_v27 = vmul.f32 %v744_v24, %v727_v25 }
 0xb9f   :  { %753 = vrot.lane.b32.xlu0 %v748_v27, %s1654_s4 }
 0xbb3   :  { %v742_v36 = vpop.permute.xlu0 %741 }
 0xbb4   :  { %v747_v38 = vmul.f32 %v742_v36, %v712_v37 }
 0xbb6   :  { %751 = vrot.lane.b32.xlu1 %v747_v38, %s1654_s4 }
 0xc11   :  { %v754_v41 = vpop.permute.xlu0 %753 }
 0xc12   :  { %v1837_v42 = vadd.f32 %v754_v41, %v738_v40 }
 0xc14   :  { %1449 = vtanh.f32 %v1837_v42  ;;  %v849_v39 = vrot.slane %v1837_v42, 7 }
 0xc1a   :  { %v1450_v44 = vpop.eup %1449 }
 0xc1b   :  { %765 = vrot.lane.b32.xlu1 %v1450_v44, %s1646_s21 }
 0xc28   :  { %v752_v48 = vpop.permute.xlu1 %751 }
 0xc29   :  { %v1842_v52 = vadd.f32 %v752_v48, %v737_v47 }
 0xc2b   :  { %1451 = vtanh.f32 %v1842_v52  ;;  %v848_v38 = vrot.slane %v1842_v52, 7 }
 0xc31   :  { %v1452_v50 = vpop.eup %1451 }
 0xc32   :  { %763 = vrot.lane.b32.xlu2 %v1452_v50, %s1646_s21 }
 0xc8c   :  { %v764_v51 = vpop.permute.xlu2 %763 }
 0xc8d   :  { %v766_v49 = vpop.permute.xlu1 %765  ;;  %v769_v54 = vmul.f32 %v764_v51, %v712_v37 }
 0xc8e   :  { %v770_v53 = vmul.f32 %v766_v49, %v727_v25 }
 0xc8f   :  { %v771_v55 = vpack.c.bf16 %v769_v54, %v769_v54 }
 0xc90   :  { %v772_v56 = vpack.c.bf16 %v770_v53, %v770_v53 }
 0xc91   :  { %v775_v57 = vunpack.c.l.b16 %v771_v55 }
 0xc92   :  { %v776_v58 = vunpack.c.l.b16 %v772_v56 }
 0xc93   :  { %v777_v59 = vrot.slane %v775_v57, 3 }
 0xc94   :  { %v778_v60 = vrot.slane %v776_v58, 2 }
 0xc96   :  { %v779_v43 = vsel %vm435_vm11, %v778_v60, %v777_v59 }
 0xc97   :  { %v780_v46 = vpack.c.b16 %v779_v43, %v779_v43 }
 0xc99   :  { %781 = vrot.lane.b32.xlu0 %v780_v46, %s1654_s4 }
 0xd0b   :  { %v782_v61 = vpop.permute.xlu0 %781 }
 0xd0c   :  { %1338 = vmatmul.msk.bf16.vlgmr.msra.gmra.mxu2 %vm331_vm12, %v782_v61 }
 0xd8f   :  { %v795_v62 = vpop.f32.mrf.mxu2 }
 0xd90   :  { %v800_v63 = vrot.slane %v795_v62, 4  ;;  %v801_v0 = vrot.slane %v795_v62, 5 }
 0xd92   :  { %v804_v3 = vadd.f32 %v800_v63, %v1771_v11  ;;  %v805_v4 = vadd.f32 %v801_v0, %v1774_v2 }
 0xd94   :  { %1453 = vtanh.f32 %v804_v3  ;;  %v1339_v8 = vmul.f32 -1.442695, %v804_v3  ;;  %v1340_v1 = vmul.f32 -1.442695, %v805_v4 }
 0xd95   :  { %1455 = vtanh.f32 %v805_v4 }
 0xd96   :  { %1457 = vpow2.f32 %v1339_v8 }
 0xd97   :  { %v797_v5 = vpop.f32.mrf.mxu2 }
 0xd9a   :  { %v1454_v6 = vpop.eup %1453 }
 0xd9b   :  { %v1456_v7 = vpop.eup %1455  ;;  %856 = vrot.lane.b32.xlu2 %v1454_v6, %s1646_s21 }
 0xd9c   :  { %858 = vrot.lane.b32.xlu1 %v1456_v7, %s1646_s21  ;;  %v1458_v9 = vpop.eup %1457 }
 0xd9d   :  { %v812_v10 = vadd.f32 1.0, %v1458_v9 }
 0xd9f   :  { %1459 = vrcp.f32 %v812_v10  ;;  %v825_v19 = vand.u32 2147483648, %v812_v10  ;;  %vm819_vm8 = vweird.f32 %v812_v10  ;;  %v823_v20 = vand.u32 2147483647, %v812_v10 }
 0xda0   :  { %1461 = vpow2.f32 %v1340_v1 }
 0xda1   :  { %v826_v22 = vor.u32 1.1754944e-38, %v825_v19  ;;  %vm824_vm10 = vcmp.eq.f32.partialorder %v823_v20, 8.507059e+37 }
 0xda5   :  { %v1460_v12 = vpop.eup %1459 }
 0xda6   :  { %v815_v13 = vmul.f32 %v1460_v12, %v812_v10  ;;  %v1462_v16 = vpop.eup %1461  ;;  %vm820_vm7 = vweird.f32 %v1460_v12 }
 0xda7   :  { %v813_v17 = vadd.f32 1.0, %v1462_v16  ;;  %vm821_vm9 = vmor %vm819_vm8, %vm820_vm7 }
 0xda8   :  { %v816_v14 = vsub.f32 1.0, %v815_v13 }
 0xda9   :  { %1463 = vrcp.f32 %v813_v17  ;;  %v840_v31 = vand.u32 2147483648, %v813_v17  ;;  %vm834_vm14 = vweird.f32 %v813_v17  ;;  %v838_v32 = vand.u32 2147483647, %v813_v17 }
 0xdaa   :  { %v817_v15 = vmul.f32 %v1460_v12, %v816_v14 }
 0xdab   :  { %v841_v34 = vor.u32 1.1754944e-38, %v840_v31  ;;  %vm839_vm0 = vcmp.eq.f32.partialorder %v838_v32, 8.507059e+37 }
 0xdac   :  { %v818_v18 = vadd.f32 %v1460_v12, %v817_v15 }
 0xdae   :  { %v822_v21 = vsel %vm821_vm9, %v1460_v12, %v818_v18 }
 0xdaf   :  { %v827_v24 = vsel %vm824_vm10, %v826_v22, %v822_v21  ;;  %v1464_v26 = vpop.eup %1463 }
 0xdb0   :  { %v830_v27 = vmul.f32 %v1464_v26, %v813_v17  ;;  %vm835_vm13 = vweird.f32 %v1464_v26  ;;  %v852_v40 = vmul.f32 %v848_v38, %v827_v24 }
 0xdb1   :  { %vm836_vm15 = vmor %vm834_vm14, %vm835_vm13 }
 0xdb2   :  { %v831_v28 = vsub.f32 1.0, %v830_v27 }
 0xdb4   :  { %v832_v29 = vmul.f32 %v1464_v26, %v831_v28 }
 0xdb6   :  { %v833_v30 = vadd.f32 %v1464_v26, %v832_v29 }
 0xdb8   :  { %v837_v33 = vsel %vm836_vm15, %v1464_v26, %v833_v30 }
 0xdb9   :  { %v842_v36 = vsel %vm839_vm0, %v841_v34, %v837_v33 }
 0xdba   :  { %v853_v41 = vmul.f32 %v849_v39, %v842_v36 }
 0xdf5   :  { %v857_v23 = vpop.permute.xlu2 %856 }
 0xdf6   :  { %v862_v25 = vmul.f32 %v857_v23, %v827_v24 }
 0xdf8   :  { %866 = vrot.lane.b32.xlu0 %v862_v25, %s1654_s4 }
 0xe0e   :  { %v859_v35 = vpop.permute.xlu1 %858 }
 0xe0f   :  { %v863_v37 = vmul.f32 %v859_v35, %v842_v36 }
 0xe11   :  { %868 = vrot.lane.b32.xlu2 %v863_v37, %s1654_s4 }
 0xe6a   :  { %v867_v44 = vpop.permute.xlu0 %866 }
 0xe6b   :  { %v869_v45 = vpop.permute.xlu2 %868  ;;  %v1857_v47 = vadd.f32 %v867_v44, %v852_v40 }
 0xe6c   :  { %v1859_v48 = vadd.f32 %v869_v45, %v853_v41 }
 0xe6d   :  { %1465 = vtanh.f32 %v1857_v47  ;;  %v963_v37 = vrot.slane %v1857_v47, 7 }
 0xe6e   :  { %1467 = vtanh.f32 %v1859_v48  ;;  %v964_v44 = vrot.slane %v1859_v48, 7 }
 0xe73   :  { %v1466_v50 = vpop.eup %1465 }
 0xe74   :  { %v1468_v51 = vpop.eup %1467  ;;  %878 = vrot.lane.b32.xlu1 %v1466_v50, %s1646_s21 }
 0xe75   :  { %880 = vrot.lane.b32.xlu0 %v1468_v51, %s1646_s21 }
 0xee6   :  { %v879_v52 = vpop.permute.xlu1 %878 }
 0xee7   :  { %v881_v42 = vpop.permute.xlu0 %880  ;;  %v884_v49 = vmul.f32 %v879_v52, %v827_v24 }
 0xee8   :  { %v885_v54 = vmul.f32 %v881_v42, %v842_v36 }
 0xee9   :  { %v886_v53 = vpack.c.bf16 %v884_v49, %v884_v49 }
 0xeea   :  { %v887_v55 = vpack.c.bf16 %v885_v54, %v885_v54 }
 0xeeb   :  { %v890_v56 = vunpack.c.l.b16 %v886_v53 }
 0xeec   :  { %v891_v57 = vunpack.c.l.b16 %v887_v55 }
 0xeed   :  { %v892_v58 = vrot.slane %v890_v56, 4 }
 0xeee   :  { %v893_v59 = vrot.slane %v891_v57, 3 }
 0xef0   :  { %v894_v60 = vsel %vm435_vm11, %v893_v59, %v892_v58 }
 0xef1   :  { %v895_v43 = vpack.c.b16 %v894_v60, %v894_v60 }
 0xef3   :  { %896 = vrot.lane.b32.xlu2 %v895_v43, %s1654_s4 }
 0xf4d   :  { %v897_v46 = vpop.permute.xlu2 %896 }
 0xf4e   :  { %1341 = vmatmul.msk.bf16.vlgmr.msrb.gmra.mxu0 %vm331_vm12, %v897_v46 }
 0xfcb   :  { %v910_v61 = vpop.f32.mrf.mxu0 }
 0xfcc   :  { %v915_v62 = vrot.slane %v910_v61, 3  ;;  %v916_v63 = vrot.slane %v910_v61, 4 }
 0xfce   :  { %v919_v0 = vadd.f32 %v915_v62, %v1771_v11  ;;  %v920_v3 = vadd.f32 %v916_v63, %v1774_v2 }
 0xfd0   :  { %1469 = vtanh.f32 %v919_v0  ;;  %v1342_v7 = vmul.f32 -1.442695, %v919_v0  ;;  %v1343_v8 = vmul.f32 -1.442695, %v920_v3 }
 0xfd1   :  { %1471 = vtanh.f32 %v920_v3 }
 0xfd2   :  { %1473 = vpow2.f32 %v1342_v7 }
 0xfd3   :  { %v912_v4 = vpop.f32.mrf.mxu0  ;;  %1475 = vpow2.f32 %v1343_v8 }
 0xfd6   :  { %v1470_v5 = vpop.eup %1469 }
 0xfd7   :  { %v1472_v6 = vpop.eup %1471  ;;  %971 = vrot.lane.b32.xlu1 %v1470_v5, %s1646_s21 }
 0xfd8   :  { %973 = vrot.lane.b32.xlu0 %v1472_v6, %s1646_s21  ;;  %v1474_v9 = vpop.eup %1473 }
 0xfd9   :  { %v1476_v10 = vpop.eup %1475  ;;  %v927_v12 = vadd.f32 1.0, %v1474_v9 }
 0xfda   :  { %v928_v1 = vadd.f32 1.0, %v1476_v10 }
 0xfdb   :  { %1477 = vrcp.f32 %v927_v12  ;;  %v940_v23 = vand.u32 2147483648, %v927_v12  ;;  %vm934_vm3 = vweird.f32 %v927_v12  ;;  %v938_v25 = vand.u32 2147483647, %v927_v12 }
 0xfdc   :  { %1479 = vrcp.f32 %v928_v1  ;;  %v955_v24 = vand.u32 2147483648, %v928_v1  ;;  %vm949_vm4 = vweird.f32 %v928_v1  ;;  %v953_v26 = vand.u32 2147483647, %v928_v1 }
 0xfdd   :  { %v941_v29 = vor.u32 1.1754944e-38, %v940_v23  ;;  %vm939_vm7 = vcmp.eq.f32.partialorder %v938_v25, 8.507059e+37 }
 0xfde   :  { %v956_v30 = vor.u32 1.1754944e-38, %v955_v24  ;;  %vm954_vm8 = vcmp.eq.f32.partialorder %v953_v26, 8.507059e+37 }
 0xfe1   :  { %v1478_v13 = vpop.eup %1477 }
 0xfe2   :  { %v1480_v14 = vpop.eup %1479  ;;  %v930_v15 = vmul.f32 %v1478_v13, %v927_v12  ;;  %vm935_vm1 = vweird.f32 %v1478_v13 }
 0xfe3   :  { %v945_v16 = vmul.f32 %v1480_v14, %v928_v1  ;;  %vm950_vm2 = vweird.f32 %v1480_v14  ;;  %vm936_vm5 = vmor %vm934_vm3, %vm935_vm1 }
 0xfe4   :  { %v931_v17 = vsub.f32 1.0, %v930_v15  ;;  %vm951_vm6 = vmor %vm949_vm4, %vm950_vm2 }
 0xfe5   :  { %v946_v18 = vsub.f32 1.0, %v945_v16 }
 0xfe6   :  { %v932_v19 = vmul.f32 %v1478_v13, %v931_v17 }
 0xfe7   :  { %v947_v20 = vmul.f32 %v1480_v14, %v946_v18 }
 0xfe8   :  { %v933_v21 = vadd.f32 %v1478_v13, %v932_v19 }
 0xfe9   :  { %v948_v22 = vadd.f32 %v1480_v14, %v947_v20 }
 0xfea   :  { %v937_v27 = vsel %vm936_vm5, %v1478_v13, %v933_v21 }
 0xfeb   :  { %v952_v28 = vsel %vm951_vm6, %v1480_v14, %v948_v22  ;;  %v942_v32 = vsel %vm939_vm7, %v941_v29, %v937_v27 }
 0xfec   :  { %v957_v34 = vsel %vm954_vm8, %v956_v30, %v952_v28  ;;  %v967_v38 = vmul.f32 %v963_v37, %v942_v32 }
 0xfed   :  { %v968_v45 = vmul.f32 %v964_v44, %v957_v34 }
0x1049   :  { %v972_v31 = vpop.permute.xlu1 %971 }
0x104a   :  { %v974_v33 = vpop.permute.xlu0 %973  ;;  %v977_v35 = vmul.f32 %v972_v31, %v942_v32 }
0x104b   :  { %v978_v36 = vmul.f32 %v974_v33, %v957_v34 }
0x104c   :  { %981 = vrot.lane.b32.xlu2 %v977_v35, %s1654_s4 }
0x104d   :  { %983 = vrot.lane.b32.xlu1 %v978_v36, %s1654_s4 }
0x10a6   :  { %v982_v39 = vpop.permute.xlu2 %981 }
0x10a7   :  { %v1875_v40 = vadd.f32 %v982_v39, %v967_v38 }
0x10a9   :  { %1481 = vtanh.f32 %v1875_v40  ;;  %v1078_v44 = vrot.slane %v1875_v40, 7 }
0x10af   :  { %v1482_v41 = vpop.eup %1481 }
0x10b0   :  { %993 = vrot.lane.b32.xlu0 %v1482_v41, %s1646_s21 }
0x10bf   :  { %v984_v50 = vpop.permute.xlu1 %983 }
0x10c0   :  { %v1880_v51 = vadd.f32 %v984_v50, %v968_v45 }
0x10c2   :  { %1483 = vtanh.f32 %v1880_v51  ;;  %v1079_v36 = vrot.slane %v1880_v51, 7 }
0x10c8   :  { %v1484_v52 = vpop.eup %1483 }
0x10c9   :  { %995 = vrot.lane.b32.xlu2 %v1484_v52, %s1646_s21 }
0x1122   :  { %v994_v47 = vpop.permute.xlu0 %993 }
0x1123   :  { %v996_v42 = vpop.permute.xlu2 %995  ;;  %v999_v49 = vmul.f32 %v994_v47, %v942_v32 }
0x1124   :  { %v1000_v54 = vmul.f32 %v996_v42, %v957_v34 }
0x1125   :  { %v1001_v53 = vpack.c.bf16 %v999_v49, %v999_v49 }
0x1126   :  { %v1002_v55 = vpack.c.bf16 %v1000_v54, %v1000_v54 }
0x1127   :  { %v1005_v56 = vunpack.c.l.b16 %v1001_v53 }
0x1128   :  { %v1006_v57 = vunpack.c.l.b16 %v1002_v55 }
0x1129   :  { %v1007_v58 = vrot.slane %v1005_v56, 5 }
0x112a   :  { %v1008_v59 = vrot.slane %v1006_v57, 4 }
0x112c   :  { %v1009_v48 = vsel %vm435_vm11, %v1008_v59, %v1007_v58 }
0x112d   :  { %v1010_v60 = vpack.c.b16 %v1009_v48, %v1009_v48 }
0x112f   :  { %1011 = vrot.lane.b32.xlu1 %v1010_v60, %s1654_s4 }
0x11a1   :  { %v1012_v43 = vpop.permute.xlu1 %1011 }
0x11a2   :  { %1344 = vmatmul.msk.bf16.vlgmr.msrb.gmra.mxu3 %vm331_vm12, %v1012_v43 }
0x1225   :  { %v1025_v46 = vpop.f32.mrf.mxu3 }
0x1226   :  { %v1030_v61 = vrot.slane %v1025_v46, 2  ;;  %v1031_v62 = vrot.slane %v1025_v46, 3 }
0x1228   :  { %v1034_v63 = vadd.f32 %v1030_v61, %v1771_v11  ;;  %v1035_v0 = vadd.f32 %v1031_v62, %v1774_v2 }
0x122a   :  { %1485 = vtanh.f32 %v1034_v63  ;;  %v1346_v6 = vmul.f32 -1.442695, %v1035_v0  ;;  %v1345_v10 = vmul.f32 -1.442695, %v1034_v63 }
0x122b   :  { %1487 = vtanh.f32 %v1035_v0 }
0x122c   :  { %1489 = vpow2.f32 %v1346_v6 }
0x122d   :  { %v1027_v3 = vpop.f32.mrf.mxu3 }
0x1230   :  { %v1486_v4 = vpop.eup %1485 }
0x1231   :  { %v1488_v5 = vpop.eup %1487  ;;  %1086 = vrot.lane.b32.xlu0 %v1486_v4, %s1646_s21 }
0x1232   :  { %1088 = vrot.lane.b32.xlu2 %v1488_v5, %s1646_s21  ;;  %v1490_v7 = vpop.eup %1489 }
0x1233   :  { %v1043_v8 = vadd.f32 1.0, %v1490_v7 }
0x1235   :  { %1491 = vrcp.f32 %v1043_v8  ;;  %v1070_v17 = vand.u32 2147483648, %v1043_v8  ;;  %vm1064_vm10 = vweird.f32 %v1043_v8  ;;  %v1068_v18 = vand.u32 2147483647, %v1043_v8 }
0x1236   :  { %1493 = vpow2.f32 %v1345_v10 }
0x1237   :  { %v1071_v20 = vor.u32 1.1754944e-38, %v1070_v17  ;;  %vm1069_vm14 = vcmp.eq.f32.partialorder %v1068_v18, 8.507059e+37 }
0x123b   :  { %v1492_v9 = vpop.eup %1491 }
0x123c   :  { %v1060_v12 = vmul.f32 %v1492_v9, %v1043_v8  ;;  %v1494_v13 = vpop.eup %1493  ;;  %vm1065_vm9 = vweird.f32 %v1492_v9 }
0x123d   :  { %v1042_v15 = vadd.f32 1.0, %v1494_v13  ;;  %vm1066_vm13 = vmor %vm1064_vm10, %vm1065_vm9 }
0x123e   :  { %v1061_v1 = vsub.f32 1.0, %v1060_v12 }
0x123f   :  { %1495 = vrcp.f32 %v1042_v15  ;;  %v1055_v29 = vand.u32 2147483648, %v1042_v15  ;;  %vm1049_vm0 = vweird.f32 %v1042_v15  ;;  %v1053_v30 = vand.u32 2147483647, %v1042_v15 }
0x1240   :  { %v1062_v14 = vmul.f32 %v1492_v9, %v1061_v1 }
0x1241   :  { %v1056_v32 = vor.u32 1.1754944e-38, %v1055_v29  ;;  %vm1054_vm2 = vcmp.eq.f32.partialorder %v1053_v30, 8.507059e+37 }
0x1242   :  { %v1063_v16 = vadd.f32 %v1492_v9, %v1062_v14 }
0x1244   :  { %v1067_v19 = vsel %vm1066_vm13, %v1492_v9, %v1063_v16  ;;  %vm1279_vm13 = vcmask 25600  }
0x1245   :  { %v1072_v22 = vsel %vm1069_vm14, %v1071_v20, %v1067_v19  ;;  %v1496_v23 = vpop.eup %1495 }
0x1246   :  { %v1045_v25 = vmul.f32 %v1496_v23, %v1042_v15  ;;  %vm1050_vm15 = vweird.f32 %v1496_v23  ;;  %v1083_v37 = vmul.f32 %v1079_v36, %v1072_v22 }
0x1247   :  { %vm1051_vm1 = vmor %vm1049_vm0, %vm1050_vm15 }
0x1248   :  { %v1046_v26 = vsub.f32 1.0, %v1045_v25 }
0x124a   :  { %v1047_v27 = vmul.f32 %v1496_v23, %v1046_v26 }
0x124c   :  { %v1048_v28 = vadd.f32 %v1496_v23, %v1047_v27 }
0x124e   :  { %v1052_v31 = vsel %vm1051_vm1, %v1496_v23, %v1048_v28 }
0x124f   :  { %v1057_v34 = vsel %vm1054_vm2, %v1056_v32, %v1052_v31 }
0x1250   :  { %v1082_v45 = vmul.f32 %v1078_v44, %v1057_v34 }
0x128c   :  { %v1089_v21 = vpop.permute.xlu2 %1088 }
0x128d   :  { %v1093_v24 = vmul.f32 %v1089_v21, %v1072_v22 }
0x128f   :  { %1098 = vrot.lane.b32.xlu0 %v1093_v24, %s1654_s4 }
0x12a3   :  { %v1087_v33 = vpop.permute.xlu0 %1086 }
0x12a4   :  { %v1092_v35 = vmul.f32 %v1087_v33, %v1057_v34 }
0x12a6   :  { %1096 = vrot.lane.b32.xlu1 %v1092_v35, %s1654_s4 }
0x1301   :  { %v1099_v38 = vpop.permute.xlu0 %1098 }
0x1302   :  { %v1894_v39 = vadd.f32 %v1099_v38, %v1083_v37 }
0x1304   :  { %1497 = vtanh.f32 %v1894_v39 }
0x130a   :  { %v1498_v41 = vpop.eup %1497 }
0x130b   :  { %1110 = vrot.lane.b32.xlu1 %v1498_v41, %s1646_s21 }
0x1318   :  { %v1097_v50 = vpop.permute.xlu1 %1096 }
0x1319   :  { %v1899_v52 = vadd.f32 %v1097_v50, %v1082_v45 }
0x131b   :  { %1499 = vtanh.f32 %v1899_v52  ;;  %v1193_v33 = vrot.slane %v1899_v52, 7  ;;  %v1365_v52 = vld [vmem:[%s1939_s8 + $0x8] sm:$0xff] }
0x131c   :  { %1272 = vmatpush.bf16.msrb.mxu2 %v1365_v52 }
0x1321   :  { %v1500_v47 = vpop.eup %1499 }
0x1322   :  { %1108 = vrot.lane.b32.xlu2 %v1500_v47, %s1646_s21 }
0x137c   :  { %v1109_v51 = vpop.permute.xlu2 %1108 }
0x137d   :  { %v1111_v42 = vpop.permute.xlu1 %1110  ;;  %v1114_v49 = vmul.f32 %v1109_v51, %v1057_v34  ;;  %v1194_v34 = vrot.slane %v1894_v39, 7  ;;  %v1364_v39 = vld [vmem:[%s1939_s8] sm:$0xff] }
0x137e   :  { %v1115_v54 = vmul.f32 %v1111_v42, %v1072_v22  ;;  %1273 = vmatpush.bf16.msrb.mxu2 %v1364_v39 }
0x137f   :  { %v1116_v53 = vpack.c.bf16 %v1114_v49, %v1114_v49 }
0x1380   :  { %v1117_v55 = vpack.c.bf16 %v1115_v54, %v1115_v54 }
0x1381   :  { %v1120_v56 = vunpack.c.l.b16 %v1116_v53 }
0x1382   :  { %v1121_v57 = vunpack.c.l.b16 %v1117_v55 }
0x1383   :  { %v1122_v58 = vrot.slane %v1120_v56, 6 }
0x1384   :  { %v1123_v59 = vrot.slane %v1121_v57, 5 }
0x1386   :  { %v1124_v40 = vsel %vm435_vm11, %v1123_v59, %v1122_v58 }
0x1387   :  { %v1125_v48 = vpack.c.b16 %v1124_v40, %v1124_v40 }
0x1389   :  { %1126 = vrot.lane.b32.xlu0 %v1125_v48, %s1654_s4 }
0x13fb   :  { %v1127_v60 = vpop.permute.xlu0 %1126 }
0x13fc   :  { %1347 = vmatmul.msk.bf16.vlgmr.msrb.gmra.mxu1 %vm331_vm12, %v1127_v60  ;;  %v1380_v60 = vld [vmem:[%s1940_s9] ss:$0 sm:$0xff] }
0x1479   :  { %v1140_v43 = vpop.f32.mrf.mxu1 }
0x147a   :  { %v1145_v46 = vrot.slane %v1140_v43, 1  ;;  %v1146_v61 = vrot.slane %v1140_v43, 2 }
0x147c   :  { %v1149_v62 = vadd.f32 %v1145_v46, %v1771_v11  ;;  %v1150_v63 = vadd.f32 %v1146_v61, %v1774_v2 }
0x147e   :  { %1501 = vtanh.f32 %v1149_v62  ;;  %v1348_v5 = vmul.f32 -1.442695, %v1149_v62  ;;  %v1349_v9 = vmul.f32 -1.442695, %v1150_v63 }
0x147f   :  { %1503 = vtanh.f32 %v1150_v63 }
0x1480   :  { %1505 = vpow2.f32 %v1348_v5 }
0x1481   :  { %v1142_v0 = vpop.f32.mrf.mxu1 }
0x1484   :  { %v1502_v3 = vpop.eup %1501 }
0x1485   :  { %v1504_v4 = vpop.eup %1503  ;;  %1201 = vrot.lane.b32.xlu2 %v1502_v3, %s1646_s21 }
0x1486   :  { %1203 = vrot.lane.b32.xlu1 %v1504_v4, %s1646_s21  ;;  %v1506_v6 = vpop.eup %1505 }
0x1487   :  { %v1157_v7 = vadd.f32 1.0, %v1506_v6 }
0x1489   :  { %1507 = vrcp.f32 %v1157_v7  ;;  %v1170_v14 = vand.u32 2147483648, %v1157_v7  ;;  %vm1164_vm4 = vweird.f32 %v1157_v7  ;;  %v1168_v15 = vand.u32 2147483647, %v1157_v7 }
0x148a   :  { %1509 = vpow2.f32 %v1349_v9 }
0x148b   :  { %v1171_v17 = vor.u32 1.1754944e-38, %v1170_v14  ;;  %vm1169_vm6 = vcmp.eq.f32.partialorder %v1168_v15, 8.507059e+37 }
0x148f   :  { %v1508_v8 = vpop.eup %1507 }
0x1490   :  { %v1160_v10 = vmul.f32 %v1508_v8, %v1157_v7  ;;  %v1510_v12 = vpop.eup %1509  ;;  %vm1165_vm3 = vweird.f32 %v1508_v8 }
0x1491   :  { %v1158_v1 = vadd.f32 1.0, %v1510_v12  ;;  %vm1166_vm5 = vmor %vm1164_vm4, %vm1165_vm3 }
0x1492   :  { %v1161_v11 = vsub.f32 1.0, %v1160_v10 }
0x1493   :  { %1511 = vrcp.f32 %v1158_v1  ;;  %v1185_v26 = vand.u32 2147483648, %v1158_v1  ;;  %vm1179_vm8 = vweird.f32 %v1158_v1  ;;  %v1183_v27 = vand.u32 2147483647, %v1158_v1 }
0x1494   :  { %v1162_v2 = vmul.f32 %v1508_v8, %v1161_v11 }
0x1495   :  { %v1186_v29 = vor.u32 1.1754944e-38, %v1185_v26  ;;  %vm1184_vm10 = vcmp.eq.f32.partialorder %v1183_v27, 8.507059e+37 }
0x1496   :  { %v1163_v13 = vadd.f32 %v1508_v8, %v1162_v2 }
0x1498   :  { %v1167_v16 = vsel %vm1166_vm5, %v1508_v8, %v1163_v13 }
0x1499   :  { %v1172_v19 = vsel %vm1169_vm6, %v1171_v17, %v1167_v16  ;;  %v1512_v21 = vpop.eup %1511 }
0x149a   :  { %v1175_v22 = vmul.f32 %v1512_v21, %v1158_v1  ;;  %vm1180_vm7 = vweird.f32 %v1512_v21  ;;  %v1197_v35 = vmul.f32 %v1193_v33, %v1172_v19 }
0x149b   :  { %vm1181_vm9 = vmor %vm1179_vm8, %vm1180_vm7 }
0x149c   :  { %v1176_v23 = vsub.f32 1.0, %v1175_v22 }
0x149e   :  { %v1177_v24 = vmul.f32 %v1512_v21, %v1176_v23 }
0x14a0   :  { %v1178_v25 = vadd.f32 %v1512_v21, %v1177_v24 }
0x14a2   :  { %v1182_v28 = vsel %vm1181_vm9, %v1512_v21, %v1178_v25 }
0x14a3   :  { %v1187_v31 = vsel %vm1184_vm10, %v1186_v29, %v1182_v28 }
0x14a4   :  { %v1198_v36 = vmul.f32 %v1194_v34, %v1187_v31 }
0x14df   :  { %v1202_v18 = vpop.permute.xlu2 %1201 }
0x14e0   :  { %v1207_v20 = vmul.f32 %v1202_v18, %v1172_v19 }
0x14e2   :  { %1211 = vrot.lane.b32.xlu0 %v1207_v20, %s1654_s4 }
0x14f8   :  { %v1204_v30 = vpop.permute.xlu1 %1203 }
0x14f9   :  { %v1208_v32 = vmul.f32 %v1204_v30, %v1187_v31 }
0x14fb   :  { %1213 = vrot.lane.b32.xlu2 %v1208_v32, %s1654_s4 }
0x1554   :  { %v1212_v37 = vpop.permute.xlu0 %1211 }
0x1555   :  { %v1214_v38 = vpop.permute.xlu2 %1213  ;;  %v1217_v41 = vadd.f32 %v1212_v37, %v1197_v35 }
0x1556   :  { %v1218_v44 = vadd.f32 %v1214_v38, %v1198_v36 }
0x1557   :  { %1513 = vtanh.f32 %v1217_v41 }
0x1558   :  { %1515 = vtanh.f32 %v1218_v44 }
0x155d   :  { %v1514_v45 = vpop.eup %1513 }
0x155e   :  { %v1516_v50 = vpop.eup %1515  ;;  %1223 = vrot.lane.b32.xlu1 %v1514_v45, %s1646_s21 }
0x155f   :  { %1225 = vrot.lane.b32.xlu0 %v1516_v50, %s1646_s21 }
0x15d0   :  { %v1224_v47 = vpop.permute.xlu1 %1223 }
0x15d1   :  { %v1226_v51 = vpop.permute.xlu0 %1225  ;;  %v1229_v42 = vmul.f32 %v1224_v47, %v1172_v19 }
0x15d2   :  { %v1230_v49 = vmul.f32 %v1226_v51, %v1187_v31 }
0x15d3   :  { %v1231_v54 = vpack.c.bf16 %v1229_v42, %v1229_v42 }
0x15d4   :  { %v1232_v53 = vpack.c.bf16 %v1230_v49, %v1230_v49 }
0x15d5   :  { %v1243_v55 = vunpack.c.l.b16 %v1231_v54 }
0x15d6   :  { %v1244_v56 = vunpack.c.l.b16 %v1232_v53 }
0x15d7   :  { %v1245_v57 = vrot.slane %v1243_v55, 7 }
0x15d8   :  { %v1246_v58 = vrot.slane %v1244_v56, 6 }
0x15da   :  { %v1247_v59 = vsel %vm435_vm11, %v1246_v58, %v1245_v57 }
0x15db   :  { %v1248_v40 = vpack.c.b16 %v1247_v59, %v1247_v59 }
0x15dd   :  { %1249 = vrot.lane.b32.xlu2 %v1248_v40, %s1654_s4 }
0x1637   :  { %v1250_v48 = vpop.permute.xlu2 %1249 }
0x1638   :  { %1358 = vmatmul.msk.bf16.vlgmr.msrb.gmra.mxu2 %vm331_vm12, %v1250_v48 }
0x16bb   :  { %v1275_v43 = vpop.f32.mrf.mxu2 }
0x16bc   :  { %v1276_v46 = vadd.f32 %v1380_v60, %v1275_v43 }
0x16be   :  { %1280 = vst.msk [vmem:[#allocation10] sm:$0x3] %vm1279_vm13, %v1276_v46 }
0x16bf   :  { %1291 = dma.vmem_to_hbm [thread:$0]  %s1287_s26, 32, %s1289_s28, [#allocation4]  }
0x16c3   :  { %v1277_v61 = vpop.f32.mrf.mxu2 }
0x16c4   :  { %1643 = dma.done.wait [#allocation4], 32  }
0x16c5   :  { %1644 = vsyncadd [#allocation4], 4294967264 }
0x16c6   :  { %1296 = vsyncpa [#allocation3], 1 }
0x16c7   :  { %1297 = vsyncpa [#allocation6], 1 }
0x16c8   :  { %1298 = vsyncpa [#allocation9], 1 }
0x16c9   :  { %1299 = vsyncpa [#allocation4], 1 }

</bundles_post_ra>
